<compile_context>
chip_gen: v7x
topology: tpu7x:2x2x1
jax: 0.10.0
libtpu: 0.0.40
codegen_flags: <defaults>
</compile_context>

<pallas_src>
import functools
import math
from dataclasses import dataclass

import jax
import jax.numpy as jnp
from jax.experimental import pallas as pl
from jax.experimental.pallas import tpu as pltpu


@dataclass
class Config:
    count: int = 2
    hidden_size: int = 32
    num_attention_heads: int = 4
    intermediate_size: int = 64
    layer_norm_eps: float = 1e-5
    initializer_range: float = 0.02


# ----------------------------- Fused layer kernel -----------------------------

def _layernorm(x, gamma, beta, eps):
    # Single cross-lane pass: sum and sum-of-squares; var = E[x^2] - mean^2.
    n = x.shape[-1]
    s1 = jnp.sum(x, axis=-1, keepdims=True)
    s2 = jnp.sum(x * x, axis=-1, keepdims=True)
    mu = s1 * (1.0 / n)
    var = s2 * (1.0 / n) - mu * mu
    return (x - mu) * jax.lax.rsqrt(var + eps) * gamma + beta


def _hsum_layer_kernel(acc_ref, add_ref, m_ref,
                       wqkv_ref, bqkv_ref,
                       ao_w_ref, ao_b_ref, ln1_g_ref, ln1_b_ref,
                       i_w_ref, i_b_ref, o_w_ref, o_b_ref,
                       ln2_g_ref, ln2_b_ref,
                       sum_ref, o_ref,
                       *, num_heads, head_dim, scale, eps):
    # --- Fused HSUM cumulative add (x is being DMA'd in anyway). ---
    x = acc_ref[...].astype(jnp.float32) + add_ref[...].astype(jnp.float32)   # (S,H)
    sum_ref[...] = x.astype(sum_ref.dtype)

    mask = m_ref[...].astype(jnp.float32)                                     # (1,S)
    S = x.shape[0]
    H = num_heads * head_dim

    # --- Fused QKV projection: one MXU matmul, bf16 operands, f32 accumulate. ---
    qkv = jnp.dot(x.astype(jnp.bfloat16), wqkv_ref[...],
                  preferred_element_type=jnp.float32) + bqkv_ref[...]         # (S,3H)

    def heads(t2d):   # (S,H) -> (NH,S,DH), bf16 for the MXU
        t3d = t2d.reshape(S, num_heads, head_dim)
        return pltpu.einshape("shd->hsd", t3d).astype(jnp.bfloat16)

    q = heads(qkv[:, :H])
    k = heads(qkv[:, H:2 * H])
    v = heads(qkv[:, 2 * H:])

    # --- Batched per-head attention: heads are the leading batch dimension,
    #     single contracting dim per dot_general (transpose-free contraction). ---
    s = jax.lax.dot_general(q, k, (((2,), (2,)), ((0,), (0,))),
                            preferred_element_type=jnp.float32) * scale       # (NH,S,S)
    s = s + mask[None, :, :]
    s = s - jnp.max(s, axis=-1, keepdims=True)
    p = jnp.exp(s)
    p = p * pl.reciprocal(jnp.sum(p, axis=-1, keepdims=True), approx=True)
    ctx = jax.lax.dot_general(p.astype(jnp.bfloat16), v,
                              (((2,), (1,)), ((0,), (0,))),
                              preferred_element_type=jnp.float32)              # (NH,S,DH)

    # --- Output projection: batched per-head matmul against ao_w (NH,DH,H),
    #     then a cheap leading-axis (cross-vreg) sum — no lane concatenate. ---
    proj = jax.lax.dot_general(ctx.astype(jnp.bfloat16), ao_w_ref[...],
                               (((2,), (1,)), ((0,), (0,))),
                               preferred_element_type=jnp.float32)             # (NH,S,H)
    attn = jnp.sum(proj, axis=0) + ao_b_ref[...]                               # (S,H)
    h1 = _layernorm(attn + x, ln1_g_ref[...], ln1_b_ref[...], eps)

    # --- FFN: intermediate (GELU) + output projection + residual + LayerNorm. ---
    inter = jnp.dot(h1.astype(jnp.bfloat16), i_w_ref[...],
                    preferred_element_type=jnp.float32) + i_b_ref[...]         # (S,I)
    # TODO(synk): HF 'gelu' is erf-exact; tanh approximation used for Mosaic-safe lowering.
    c = math.sqrt(2.0 / math.pi)
    inter = 0.5 * inter * (1.0 + jnp.tanh(c * (inter + 0.044715 * inter * inter * inter)))
    ffn = jnp.dot(inter.astype(jnp.bfloat16), o_w_ref[...],
                  preferred_element_type=jnp.float32) + o_b_ref[...]           # (S,H)
    y = _layernorm(ffn + h1, ln2_g_ref[...], ln2_b_ref[...], eps)
    o_ref[...] = y.astype(o_ref.dtype)


def hsum_layer(acc, layer_in, mask_add, p, cfg):
    """One HSUM step: (running_sum, new_layer, mask) -> (new_running_sum, logits).

    acc, layer_in: (B,S,H); mask_add: (B,1,S) additive mask.
    """
    B, S, H = acc.shape
    nh = cfg.num_attention_heads
    dh = H // nh
    I = cfg.intermediate_size

    def const_spec(arr):
        # Same block every grid step -> single-buffer (no point double-buffering).
        return pl.BlockSpec(arr.shape, lambda b, _nd=arr.ndim: (0,) * _nd,
                            pipeline_mode=pl.Buffered(buffer_count=1))

    bqkv = p["qkv_b"].reshape(1, 3 * H)
    ao_w3 = p["ao_w"].reshape(nh, dh, H)   # head-major rows -> (NH,DH,H) for batched proj
    ao_b = p["ao_b"].reshape(1, H)
    i_b = p["i_b"].reshape(1, I)
    o_b = p["o_b"].reshape(1, H)
    ln1_g = p["ln1_g"].reshape(1, H)
    ln1_b = p["ln1_b"].reshape(1, H)
    ln2_g = p["ln2_g"].reshape(1, H)
    ln2_b = p["ln2_b"].reshape(1, H)

    kernel = functools.partial(
        _hsum_layer_kernel,
        num_heads=nh, head_dim=dh, scale=1.0 / math.sqrt(dh),
        eps=cfg.layer_norm_eps)

    # Advisory cost estimate (per call, all batches).
    flops = 2 * B * S * (3 * H * H + 2 * S * H + H * H + 2 * H * I)
    transcendentals = B * S * (nh * S + I)
    bytes_accessed = (4 * B * S * H * 4                     # 2 f32 in + 2 f32 out
                      + B * S * 4                           # mask
                      + 2 * (3 * H * H + H * H + 2 * H * I)  # bf16 weights
                      + 4 * (3 * H + 2 * H + I + 4 * H))     # f32 biases / LN params

    hsum_out, logits = pl.pallas_call(
        kernel,
        out_shape=(jax.ShapeDtypeStruct((B, S, H), acc.dtype),
                   jax.ShapeDtypeStruct((B, S, H), acc.dtype)),
        grid=(B,),
        in_specs=[
            pl.BlockSpec((None, S, H), lambda b: (b, 0, 0)),   # running sum
            pl.BlockSpec((None, S, H), lambda b: (b, 0, 0)),   # new hidden layer
            pl.BlockSpec((None, 1, S), lambda b: (b, 0, 0)),   # additive mask
            const_spec(p["qkv_w"]), const_spec(bqkv),
            const_spec(ao_w3), const_spec(ao_b), const_spec(ln1_g), const_spec(ln1_b),
            const_spec(p["i_w"]), const_spec(i_b), const_spec(p["o_w"]), const_spec(o_b),
            const_spec(ln2_g), const_spec(ln2_b),
        ],
        out_specs=(pl.BlockSpec((None, S, H), lambda b: (b, 0, 0)),
                   pl.BlockSpec((None, S, H), lambda b: (b, 0, 0))),
        compiler_params=pltpu.CompilerParams(
            dimension_semantics=("parallel",)),                # sharded over v7x's 2 TCs
        cost_estimate=pl.CostEstimate(flops=flops,
                                      transcendentals=transcendentals,
                                      bytes_accessed=bytes_accessed),
    )(acc, layer_in, mask_add, p["qkv_w"], bqkv,
      ao_w3, ao_b, ln1_g, ln1_b,
      p["i_w"], i_b, p["o_w"], o_b, ln2_g, ln2_b)
    return hsum_out, logits


# ----------------------------- Params & HSUM glue -----------------------------

def init_roberta_layer_params(key, cfg):
    H, I = cfg.hidden_size, cfg.intermediate_size
    std = cfg.initializer_range
    ks = jax.random.split(key, 4)

    def lin(k, fan_in, fan_out):
        # Weights stored bf16 (MXU-native); biases / LN params stay f32.
        w = (jax.random.normal(k, (fan_in, fan_out), jnp.float32) * std).astype(jnp.bfloat16)
        return w, jnp.zeros((fan_out,), jnp.float32)

    p = {}
    # Q/K/V fused into a single (H, 3H) projection (same N(0, std) init).
    p["qkv_w"], p["qkv_b"] = lin(ks[0], H, 3 * H)
    p["ao_w"], p["ao_b"] = lin(ks[1], H, H)
    p["i_w"], p["i_b"] = lin(ks[2], H, I)
    p["o_w"], p["o_b"] = lin(ks[3], I, H)
    p["ln1_g"] = jnp.ones((H,), jnp.float32)
    p["ln1_b"] = jnp.zeros((H,), jnp.float32)
    p["ln2_g"] = jnp.ones((H,), jnp.float32)
    p["ln2_b"] = jnp.zeros((H,), jnp.float32)
    return p


def hsum_forward(layers, attention_mask, params_list, cfg, return_list=False):
    """Mirrors HSUM.forward: cumulative-sum of the last `count` hidden layers,
    each passed through its own RobertaLayer; logits are averaged.  The
    cumulative add is fused into the layer kernel (second kernel output)."""
    mask_add = (1.0 - attention_mask.astype(jnp.float32))[:, None, :] * (-1e9)  # (B,1,S)
    logitses = []
    output = jnp.zeros_like(layers[0])
    for i in range(cfg.count):
        output, logits = hsum_layer(output, layers[-i - 1], mask_add,
                                    params_list[i], cfg)
        logitses.append(logits)
    if return_list:
        return logitses
    avg_logits = sum(logitses) / cfg.count
    return avg_logits


# ----------------------------- Demo -----------------------------

if __name__ == "__main__":
    cfg = Config(count=2, hidden_size=32, num_attention_heads=4,
                 intermediate_size=64)

    key = jax.random.PRNGKey(0)
    k_layers, k_params = jax.random.split(key)

    B, S, H = 2, 8, cfg.hidden_size
    layer_keys = jax.random.split(k_layers, cfg.count)
    layers = [jax.random.normal(layer_keys[i], (B, S, H), jnp.float32)
              for i in range(cfg.count)]

    # keep-mask: batch 1 has its last 2 tokens padded out
    attention_mask = jnp.ones((B, S), jnp.float32).at[1, -2:].set(0.0)

    param_keys = jax.random.split(k_params, cfg.count)
    params_list = [init_roberta_layer_params(param_keys[i], cfg)
                   for i in range(cfg.count)]

    out = hsum_forward(layers, attention_mask, params_list, cfg)
    out = jax.block_until_ready(out)
    assert out.shape == (B, S, H) and bool(jnp.all(jnp.isfinite(out)))
    print("KERNEL_OK")
</pallas_src>

<mosaic_0001>
module attributes {stable_mosaic.version = 11 : i64} {
  func.func @_hsum_layer_kernel(%arg0: i32, %arg1: memref<1x8x32xf32, #tpu.memory_space<vmem>>, %arg2: memref<1x8x32xf32, #tpu.memory_space<vmem>>, %arg3: memref<1x1x8xf32, #tpu.memory_space<vmem>>, %arg4: memref<32x96xbf16, #tpu.memory_space<vmem>>, %arg5: memref<1x96xf32, #tpu.memory_space<vmem>>, %arg6: memref<4x8x32xbf16, #tpu.memory_space<vmem>>, %arg7: memref<1x32xf32, #tpu.memory_space<vmem>>, %arg8: memref<1x32xf32, #tpu.memory_space<vmem>>, %arg9: memref<1x32xf32, #tpu.memory_space<vmem>>, %arg10: memref<32x64xbf16, #tpu.memory_space<vmem>>, %arg11: memref<1x64xf32, #tpu.memory_space<vmem>>, %arg12: memref<64x32xbf16, #tpu.memory_space<vmem>>, %arg13: memref<1x32xf32, #tpu.memory_space<vmem>>, %arg14: memref<1x32xf32, #tpu.memory_space<vmem>>, %arg15: memref<1x32xf32, #tpu.memory_space<vmem>>, %arg16: memref<1x8x32xf32, #tpu.memory_space<vmem>>, %arg17: memref<1x8x32xf32, #tpu.memory_space<vmem>>) attributes {dimension_semantics = [#tpu.dimension_semantics<parallel>], iteration_bounds = array<i64: 2>, scalar_prefetch = 0 : i64, scratch_operands = 0 : i64, tpu.core_type = #tpu.core_type<tc>, window_params = [{transform_indices = @transform_0, window_bounds = array<i64: 1, 8, 32>}, {transform_indices = @transform_1, window_bounds = array<i64: 1, 8, 32>}, {transform_indices = @transform_2, window_bounds = array<i64: 1, 1, 8>}, {pipeline_mode = #tpu.pipeline_mode<synchronous>, transform_indices = @transform_3, window_bounds = array<i64: 32, 96>}, {pipeline_mode = #tpu.pipeline_mode<synchronous>, transform_indices = @transform_4, window_bounds = array<i64: 1, 96>}, {pipeline_mode = #tpu.pipeline_mode<synchronous>, transform_indices = @transform_5, window_bounds = array<i64: 4, 8, 32>}, {pipeline_mode = #tpu.pipeline_mode<synchronous>, transform_indices = @transform_6, window_bounds = array<i64: 1, 32>}, {pipeline_mode = #tpu.pipeline_mode<synchronous>, transform_indices = @transform_7, window_bounds = array<i64: 1, 32>}, {pipeline_mode = #tpu.pipeline_mode<synchronous>, transform_indices = @transform_8, window_bounds = array<i64: 1, 32>}, {pipeline_mode = #tpu.pipeline_mode<synchronous>, transform_indices = @transform_9, window_bounds = array<i64: 32, 64>}, {pipeline_mode = #tpu.pipeline_mode<synchronous>, transform_indices = @transform_10, window_bounds = array<i64: 1, 64>}, {pipeline_mode = #tpu.pipeline_mode<synchronous>, transform_indices = @transform_11, window_bounds = array<i64: 64, 32>}, {pipeline_mode = #tpu.pipeline_mode<synchronous>, transform_indices = @transform_12, window_bounds = array<i64: 1, 32>}, {pipeline_mode = #tpu.pipeline_mode<synchronous>, transform_indices = @transform_13, window_bounds = array<i64: 1, 32>}, {pipeline_mode = #tpu.pipeline_mode<synchronous>, transform_indices = @transform_14, window_bounds = array<i64: 1, 32>}, {transform_indices = @transform_15, window_bounds = array<i64: 1, 8, 32>}, {transform_indices = @transform_16, window_bounds = array<i64: 1, 8, 32>}]} {
    %c0 = arith.constant 0 : index
    %c0_0 = arith.constant 0 : index
    %c0_1 = arith.constant 0 : index
    %0 = vector.load %arg1[%c0, %c0_0, %c0_1] : memref<1x8x32xf32, #tpu.memory_space<vmem>>, vector<1x8x32xf32>
    %1 = vector.shape_cast %0 : vector<1x8x32xf32> to vector<8x32xf32>
    %c0_2 = arith.constant 0 : index
    %c0_3 = arith.constant 0 : index
    %c0_4 = arith.constant 0 : index
    %2 = vector.load %arg2[%c0_2, %c0_3, %c0_4] : memref<1x8x32xf32, #tpu.memory_space<vmem>>, vector<1x8x32xf32>
    %3 = vector.shape_cast %2 : vector<1x8x32xf32> to vector<8x32xf32>
    %4 = arith.addf %1, %3 : vector<8x32xf32>
    %c0_5 = arith.constant 0 : index
    %c0_6 = arith.constant 0 : index
    %c0_7 = arith.constant 0 : index
    %5 = vector.load %arg16[%c0_5, %c0_6, %c0_7] : memref<1x8x32xf32, #tpu.memory_space<vmem>>, vector<1x8x32xf32>
    %6 = vector.shape_cast %5 : vector<1x8x32xf32> to vector<8x32xf32>
    %7 = vector.shape_cast %4 : vector<8x32xf32> to vector<1x8x32xf32>
    tpu.vector_store %arg16[%c0_5, %c0_6, %c0_7], %7 {strides = array<i32>} : memref<1x8x32xf32, #tpu.memory_space<vmem>>, vector<1x8x32xf32>,
    %c0_8 = arith.constant 0 : index
    %c0_9 = arith.constant 0 : index
    %c0_10 = arith.constant 0 : index
    %8 = vector.load %arg3[%c0_8, %c0_9, %c0_10] : memref<1x1x8xf32, #tpu.memory_space<vmem>>, vector<1x1x8xf32>
    %9 = vector.shape_cast %8 : vector<1x1x8xf32> to vector<1x8xf32>
    %10 = arith.truncf %4 : vector<8x32xf32> to vector<8x32xbf16>
    %c0_11 = arith.constant 0 : index
    %c0_12 = arith.constant 0 : index
    %11 = vector.load %arg4[%c0_11, %c0_12] : memref<32x96xbf16, #tpu.memory_space<vmem>>, vector<32x96xbf16>
    %cst = arith.constant dense<0.000000e+00> : vector<8x96xf32>
    %12 = tpu.matmul %10, %11, %cst {dimension_numbers = #tpu.dot_dimension_numbers<[1], [0], [0], [1], [0, 0, 1, 1], [], []>} : vector<8x32xbf16>, vector<32x96xbf16>, vector<8x96xf32> -> vector<8x96xf32>
    %c0_13 = arith.constant 0 : index
    %c0_14 = arith.constant 0 : index
    %13 = vector.load %arg5[%c0_13, %c0_14] : memref<1x96xf32, #tpu.memory_space<vmem>>, vector<1x96xf32>
    %14 = vector.broadcast %13 : vector<1x96xf32> to vector<8x96xf32>
    %15 = arith.addf %12, %14 : vector<8x96xf32>
    %16 = vector.extract_strided_slice %15 {offsets = [0, 0], sizes = [8, 32], strides = [1, 1]} : vector<8x96xf32> to vector<8x32xf32>
    %17 = vector.shape_cast %16 : vector<8x32xf32> to vector<8x4x8xf32>
    %18 = tpu.transpose %17, [1, 0, 2] : vector<8x4x8xf32> -> vector<4x8x8xf32>
    %19 = arith.truncf %18 : vector<4x8x8xf32> to vector<4x8x8xbf16>
    %20 = vector.extract_strided_slice %15 {offsets = [0, 32], sizes = [8, 32], strides = [1, 1]} : vector<8x96xf32> to vector<8x32xf32>
    %21 = vector.shape_cast %20 : vector<8x32xf32> to vector<8x4x8xf32>
    %22 = tpu.transpose %21, [1, 0, 2] : vector<8x4x8xf32> -> vector<4x8x8xf32>
    %23 = arith.truncf %22 : vector<4x8x8xf32> to vector<4x8x8xbf16>
    %24 = vector.extract_strided_slice %15 {offsets = [0, 64], sizes = [8, 32], strides = [1, 1]} : vector<8x96xf32> to vector<8x32xf32>
    %25 = vector.shape_cast %24 : vector<8x32xf32> to vector<8x4x8xf32>
    %26 = tpu.transpose %25, [1, 0, 2] : vector<8x4x8xf32> -> vector<4x8x8xf32>
    %27 = arith.truncf %26 : vector<4x8x8xf32> to vector<4x8x8xbf16>
    %cst_15 = arith.constant dense<0.000000e+00> : vector<4x8x8xf32>
    %28 = tpu.matmul %19, %23, %cst_15 {dimension_numbers = #tpu.dot_dimension_numbers<[2], [2], [1], [1], [0, 0, 0, 1, 1, 1], [0], [0]>} : vector<4x8x8xbf16>, vector<4x8x8xbf16>, vector<4x8x8xf32> -> vector<4x8x8xf32>
    %cst_16 = arith.constant 0.353553385 : f32
    %29 = vector.broadcast %cst_16 : f32 to vector<4x8x8xf32>
    %30 = arith.mulf %28, %29 : vector<4x8x8xf32>
    %31 = vector.shape_cast %9 : vector<1x8xf32> to vector<1x1x8xf32>
    %32 = vector.broadcast %31 : vector<1x1x8xf32> to vector<4x8x8xf32>
    %33 = arith.addf %30, %32 : vector<4x8x8xf32>
    %cst_17 = arith.constant dense<0xFF800000> : vector<4x8xf32>
    %34 = vector.multi_reduction <maximumf>, %33, %cst_17 [2] : vector<4x8x8xf32> to vector<4x8xf32>
    %35 = vector.shape_cast %34 : vector<4x8xf32> to vector<4x8x1xf32>
    %36 = vector.broadcast %35 : vector<4x8x1xf32> to vector<4x8x8xf32>
    %37 = arith.subf %33, %36 : vector<4x8x8xf32>
    %38 = math.exp %37 : vector<4x8x8xf32>
    %cst_18 = arith.constant dense<0.000000e+00> : vector<4x8xf32>
    %39 = vector.multi_reduction <add>, %38, %cst_18 [2] : vector<4x8x8xf32> to vector<4x8xf32>
    %40 = vector.shape_cast %39 : vector<4x8xf32> to vector<4x8x1xf32>
    %41 = tpu.reciprocal %40 {approx = true} : vector<4x8x1xf32> -> vector<4x8x1xf32>
    %42 = vector.broadcast %41 : vector<4x8x1xf32> to vector<4x8x8xf32>
    %43 = arith.mulf %38, %42 : vector<4x8x8xf32>
    %44 = arith.truncf %43 : vector<4x8x8xf32> to vector<4x8x8xbf16>
    %cst_19 = arith.constant dense<0.000000e+00> : vector<4x8x8xf32>
    %45 = tpu.matmul %44, %27, %cst_19 {dimension_numbers = #tpu.dot_dimension_numbers<[2], [1], [1], [2], [0, 0, 0, 1, 1, 2], [0], [0]>} : vector<4x8x8xbf16>, vector<4x8x8xbf16>, vector<4x8x8xf32> -> vector<4x8x8xf32>
    %46 = arith.truncf %45 : vector<4x8x8xf32> to vector<4x8x8xbf16>
    %c0_20 = arith.constant 0 : index
    %c0_21 = arith.constant 0 : index
    %c0_22 = arith.constant 0 : index
    %47 = vector.load %arg6[%c0_20, %c0_21, %c0_22] : memref<4x8x32xbf16, #tpu.memory_space<vmem>>, vector<4x8x32xbf16>
    %cst_23 = arith.constant dense<0.000000e+00> : vector<4x8x32xf32>
    %48 = tpu.matmul %46, %47, %cst_23 {dimension_numbers = #tpu.dot_dimension_numbers<[2], [1], [1], [2], [0, 0, 0, 1, 1, 2], [0], [0]>} : vector<4x8x8xbf16>, vector<4x8x32xbf16>, vector<4x8x32xf32> -> vector<4x8x32xf32>
    %cst_24 = arith.constant dense<0.000000e+00> : vector<8x32xf32>
    %49 = vector.multi_reduction <add>, %48, %cst_24 [0] : vector<4x8x32xf32> to vector<8x32xf32>
    %c0_25 = arith.constant 0 : index
    %c0_26 = arith.constant 0 : index
    %50 = vector.load %arg7[%c0_25, %c0_26] : memref<1x32xf32, #tpu.memory_space<vmem>>, vector<1x32xf32>
    %51 = vector.broadcast %50 : vector<1x32xf32> to vector<8x32xf32>
    %52 = arith.addf %49, %51 : vector<8x32xf32>
    %53 = arith.addf %52, %4 : vector<8x32xf32>
    %c0_27 = arith.constant 0 : index
    %c0_28 = arith.constant 0 : index
    %54 = vector.load %arg8[%c0_27, %c0_28] : memref<1x32xf32, #tpu.memory_space<vmem>>, vector<1x32xf32>
    %c0_29 = arith.constant 0 : index
    %c0_30 = arith.constant 0 : index
    %55 = vector.load %arg9[%c0_29, %c0_30] : memref<1x32xf32, #tpu.memory_space<vmem>>, vector<1x32xf32>
    %cst_31 = arith.constant dense<0.000000e+00> : vector<8xf32>
    %56 = vector.multi_reduction <add>, %53, %cst_31 [1] : vector<8x32xf32> to vector<8xf32>
    %57 = vector.shape_cast %56 : vector<8xf32> to vector<8x1xf32>
    %58 = arith.mulf %53, %53 : vector<8x32xf32>
    %cst_32 = arith.constant dense<0.000000e+00> : vector<8xf32>
    %59 = vector.multi_reduction <add>, %58, %cst_32 [1] : vector<8x32xf32> to vector<8xf32>
    %60 = vector.shape_cast %59 : vector<8xf32> to vector<8x1xf32>
    %cst_33 = arith.constant 3.125000e-02 : f32
    %61 = vector.broadcast %cst_33 : f32 to vector<8x1xf32>
    %62 = arith.mulf %57, %61 : vector<8x1xf32>
    %cst_34 = arith.constant 3.125000e-02 : f32
    %63 = vector.broadcast %cst_34 : f32 to vector<8x1xf32>
    %64 = arith.mulf %60, %63 : vector<8x1xf32>
    %65 = arith.mulf %62, %62 : vector<8x1xf32>
    %66 = arith.subf %64, %65 : vector<8x1xf32>
    %67 = vector.broadcast %62 : vector<8x1xf32> to vector<8x32xf32>
    %68 = arith.subf %53, %67 : vector<8x32xf32>
    %cst_35 = arith.constant 9.99999974E-6 : f32
    %69 = vector.broadcast %cst_35 : f32 to vector<8x1xf32>
    %70 = arith.addf %66, %69 : vector<8x1xf32>
    %71 = math.rsqrt %70 : vector<8x1xf32>
    %72 = vector.broadcast %71 : vector<8x1xf32> to vector<8x32xf32>
    %73 = arith.mulf %68, %72 : vector<8x32xf32>
    %74 = vector.broadcast %54 : vector<1x32xf32> to vector<8x32xf32>
    %75 = arith.mulf %73, %74 : vector<8x32xf32>
    %76 = vector.broadcast %55 : vector<1x32xf32> to vector<8x32xf32>
    %77 = arith.addf %75, %76 : vector<8x32xf32>
    %78 = arith.truncf %77 : vector<8x32xf32> to vector<8x32xbf16>
    %c0_36 = arith.constant 0 : index
    %c0_37 = arith.constant 0 : index
    %79 = vector.load %arg10[%c0_36, %c0_37] : memref<32x64xbf16, #tpu.memory_space<vmem>>, vector<32x64xbf16>
    %cst_38 = arith.constant dense<0.000000e+00> : vector<8x64xf32>
    %80 = tpu.matmul %78, %79, %cst_38 {dimension_numbers = #tpu.dot_dimension_numbers<[1], [0], [0], [1], [0, 0, 1, 1], [], []>} : vector<8x32xbf16>, vector<32x64xbf16>, vector<8x64xf32> -> vector<8x64xf32>
    %c0_39 = arith.constant 0 : index
    %c0_40 = arith.constant 0 : index
    %81 = vector.load %arg11[%c0_39, %c0_40] : memref<1x64xf32, #tpu.memory_space<vmem>>, vector<1x64xf32>
    %82 = vector.broadcast %81 : vector<1x64xf32> to vector<8x64xf32>
    %83 = arith.addf %80, %82 : vector<8x64xf32>
    %cst_41 = arith.constant 5.000000e-01 : f32
    %84 = vector.broadcast %cst_41 : f32 to vector<8x64xf32>
    %85 = arith.mulf %84, %83 : vector<8x64xf32>
    %cst_42 = arith.constant 4.471500e-02 : f32
    %86 = vector.broadcast %cst_42 : f32 to vector<8x64xf32>
    %87 = arith.mulf %86, %83 : vector<8x64xf32>
    %88 = arith.mulf %87, %83 : vector<8x64xf32>
    %89 = arith.mulf %88, %83 : vector<8x64xf32>
    %90 = arith.addf %83, %89 : vector<8x64xf32>
    %cst_43 = arith.constant 0.797884583 : f32
    %91 = vector.broadcast %cst_43 : f32 to vector<8x64xf32>
    %92 = arith.mulf %91, %90 : vector<8x64xf32>
    %93 = math.tanh %92 : vector<8x64xf32>
    %cst_44 = arith.constant 1.000000e+00 : f32
    %94 = vector.broadcast %cst_44 : f32 to vector<8x64xf32>
    %95 = arith.addf %94, %93 : vector<8x64xf32>
    %96 = arith.mulf %85, %95 : vector<8x64xf32>
    %97 = arith.truncf %96 : vector<8x64xf32> to vector<8x64xbf16>
    %c0_45 = arith.constant 0 : index
    %c0_46 = arith.constant 0 : index
    %98 = vector.load %arg12[%c0_45, %c0_46] : memref<64x32xbf16, #tpu.memory_space<vmem>>, vector<64x32xbf16>
    %cst_47 = arith.constant dense<0.000000e+00> : vector<8x32xf32>
    %99 = tpu.matmul %97, %98, %cst_47 {dimension_numbers = #tpu.dot_dimension_numbers<[1], [0], [0], [1], [0, 0, 1, 1], [], []>} : vector<8x64xbf16>, vector<64x32xbf16>, vector<8x32xf32> -> vector<8x32xf32>
    %c0_48 = arith.constant 0 : index
    %c0_49 = arith.constant 0 : index
    %100 = vector.load %arg13[%c0_48, %c0_49] : memref<1x32xf32, #tpu.memory_space<vmem>>, vector<1x32xf32>
    %101 = vector.broadcast %100 : vector<1x32xf32> to vector<8x32xf32>
    %102 = arith.addf %99, %101 : vector<8x32xf32>
    %103 = arith.addf %102, %77 : vector<8x32xf32>
    %c0_50 = arith.constant 0 : index
    %c0_51 = arith.constant 0 : index
    %104 = vector.load %arg14[%c0_50, %c0_51] : memref<1x32xf32, #tpu.memory_space<vmem>>, vector<1x32xf32>
    %c0_52 = arith.constant 0 : index
    %c0_53 = arith.constant 0 : index
    %105 = vector.load %arg15[%c0_52, %c0_53] : memref<1x32xf32, #tpu.memory_space<vmem>>, vector<1x32xf32>
    %cst_54 = arith.constant dense<0.000000e+00> : vector<8xf32>
    %106 = vector.multi_reduction <add>, %103, %cst_54 [1] : vector<8x32xf32> to vector<8xf32>
    %107 = vector.shape_cast %106 : vector<8xf32> to vector<8x1xf32>
    %108 = arith.mulf %103, %103 : vector<8x32xf32>
    %cst_55 = arith.constant dense<0.000000e+00> : vector<8xf32>
    %109 = vector.multi_reduction <add>, %108, %cst_55 [1] : vector<8x32xf32> to vector<8xf32>
    %110 = vector.shape_cast %109 : vector<8xf32> to vector<8x1xf32>
    %cst_56 = arith.constant 3.125000e-02 : f32
    %111 = vector.broadcast %cst_56 : f32 to vector<8x1xf32>
    %112 = arith.mulf %107, %111 : vector<8x1xf32>
    %cst_57 = arith.constant 3.125000e-02 : f32
    %113 = vector.broadcast %cst_57 : f32 to vector<8x1xf32>
    %114 = arith.mulf %110, %113 : vector<8x1xf32>
    %115 = arith.mulf %112, %112 : vector<8x1xf32>
    %116 = arith.subf %114, %115 : vector<8x1xf32>
    %117 = vector.broadcast %112 : vector<8x1xf32> to vector<8x32xf32>
    %118 = arith.subf %103, %117 : vector<8x32xf32>
    %cst_58 = arith.constant 9.99999974E-6 : f32
    %119 = vector.broadcast %cst_58 : f32 to vector<8x1xf32>
    %120 = arith.addf %116, %119 : vector<8x1xf32>
    %121 = math.rsqrt %120 : vector<8x1xf32>
    %122 = vector.broadcast %121 : vector<8x1xf32> to vector<8x32xf32>
    %123 = arith.mulf %118, %122 : vector<8x32xf32>
    %124 = vector.broadcast %104 : vector<1x32xf32> to vector<8x32xf32>
    %125 = arith.mulf %123, %124 : vector<8x32xf32>
    %126 = vector.broadcast %105 : vector<1x32xf32> to vector<8x32xf32>
    %127 = arith.addf %125, %126 : vector<8x32xf32>
    %c0_59 = arith.constant 0 : index
    %c0_60 = arith.constant 0 : index
    %c0_61 = arith.constant 0 : index
    %128 = vector.load %arg17[%c0_59, %c0_60, %c0_61] : memref<1x8x32xf32, #tpu.memory_space<vmem>>, vector<1x8x32xf32>
    %129 = vector.shape_cast %128 : vector<1x8x32xf32> to vector<8x32xf32>
    %130 = vector.shape_cast %127 : vector<8x32xf32> to vector<1x8x32xf32>
    tpu.vector_store %arg17[%c0_59, %c0_60, %c0_61], %130 {strides = array<i32>} : memref<1x8x32xf32, #tpu.memory_space<vmem>>, vector<1x8x32xf32>,
    return
  }
  func.func @transform_0(%arg0: i32) -> (i32, i32, i32) {
    %c0_i32 = arith.constant 0 : i32
    %c0_i32_0 = arith.constant 0 : i32
    %c0_i32_1 = arith.constant 0 : i32
    return %arg0, %c0_i32, %c0_i32_0 : i32, i32, i32
  }
  func.func @transform_1(%arg0: i32) -> (i32, i32, i32) {
    %c0_i32 = arith.constant 0 : i32
    %c0_i32_0 = arith.constant 0 : i32
    %c0_i32_1 = arith.constant 0 : i32
    return %arg0, %c0_i32, %c0_i32_0 : i32, i32, i32
  }
  func.func @transform_2(%arg0: i32) -> (i32, i32, i32) {
    %c0_i32 = arith.constant 0 : i32
    %c0_i32_0 = arith.constant 0 : i32
    %c0_i32_1 = arith.constant 0 : i32
    return %arg0, %c0_i32, %c0_i32_0 : i32, i32, i32
  }
  func.func @transform_3(%arg0: i32) -> (i32, i32) {
    %c0_i32 = arith.constant 0 : i32
    %c0_i32_0 = arith.constant 0 : i32
    %c0_i32_1 = arith.constant 0 : i32
    return %c0_i32, %c0_i32_0 : i32, i32
  }
  func.func @transform_4(%arg0: i32) -> (i32, i32) {
    %c0_i32 = arith.constant 0 : i32
    %c0_i32_0 = arith.constant 0 : i32
    %c0_i32_1 = arith.constant 0 : i32
    return %c0_i32, %c0_i32_0 : i32, i32
  }
  func.func @transform_5(%arg0: i32) -> (i32, i32, i32) {
    %c0_i32 = arith.constant 0 : i32
    %c0_i32_0 = arith.constant 0 : i32
    %c0_i32_1 = arith.constant 0 : i32
    %c0_i32_2 = arith.constant 0 : i32
    return %c0_i32, %c0_i32_0, %c0_i32_1 : i32, i32, i32
  }
  func.func @transform_6(%arg0: i32) -> (i32, i32) {
    %c0_i32 = arith.constant 0 : i32
    %c0_i32_0 = arith.constant 0 : i32
    %c0_i32_1 = arith.constant 0 : i32
    return %c0_i32, %c0_i32_0 : i32, i32
  }
  func.func @transform_7(%arg0: i32) -> (i32, i32) {
    %c0_i32 = arith.constant 0 : i32
    %c0_i32_0 = arith.constant 0 : i32
    %c0_i32_1 = arith.constant 0 : i32
    return %c0_i32, %c0_i32_0 : i32, i32
  }
  func.func @transform_8(%arg0: i32) -> (i32, i32) {
    %c0_i32 = arith.constant 0 : i32
    %c0_i32_0 = arith.constant 0 : i32
    %c0_i32_1 = arith.constant 0 : i32
    return %c0_i32, %c0_i32_0 : i32, i32
  }
  func.func @transform_9(%arg0: i32) -> (i32, i32) {
    %c0_i32 = arith.constant 0 : i32
    %c0_i32_0 = arith.constant 0 : i32
    %c0_i32_1 = arith.constant 0 : i32
    return %c0_i32, %c0_i32_0 : i32, i32
  }
  func.func @transform_10(%arg0: i32) -> (i32, i32) {
    %c0_i32 = arith.constant 0 : i32
    %c0_i32_0 = arith.constant 0 : i32
    %c0_i32_1 = arith.constant 0 : i32
    return %c0_i32, %c0_i32_0 : i32, i32
  }
  func.func @transform_11(%arg0: i32) -> (i32, i32) {
    %c0_i32 = arith.constant 0 : i32
    %c0_i32_0 = arith.constant 0 : i32
    %c0_i32_1 = arith.constant 0 : i32
    return %c0_i32, %c0_i32_0 : i32, i32
  }
  func.func @transform_12(%arg0: i32) -> (i32, i32) {
    %c0_i32 = arith.constant 0 : i32
    %c0_i32_0 = arith.constant 0 : i32
    %c0_i32_1 = arith.constant 0 : i32
    return %c0_i32, %c0_i32_0 : i32, i32
  }
  func.func @transform_13(%arg0: i32) -> (i32, i32) {
    %c0_i32 = arith.constant 0 : i32
    %c0_i32_0 = arith.constant 0 : i32
    %c0_i32_1 = arith.constant 0 : i32
    return %c0_i32, %c0_i32_0 : i32, i32
  }
  func.func @transform_14(%arg0: i32) -> (i32, i32) {
    %c0_i32 = arith.constant 0 : i32
    %c0_i32_0 = arith.constant 0 : i32
    %c0_i32_1 = arith.constant 0 : i32
    return %c0_i32, %c0_i32_0 : i32, i32
  }
  func.func @transform_15(%arg0: i32) -> (i32, i32, i32) {
    %c0_i32 = arith.constant 0 : i32
    %c0_i32_0 = arith.constant 0 : i32
    %c0_i32_1 = arith.constant 0 : i32
    return %arg0, %c0_i32, %c0_i32_0 : i32, i32, i32
  }
  func.func @transform_16(%arg0: i32) -> (i32, i32, i32) {
    %c0_i32 = arith.constant 0 : i32
    %c0_i32_0 = arith.constant 0 : i32
    %c0_i32_1 = arith.constant 0 : i32
    return %arg0, %c0_i32, %c0_i32_0 : i32, i32, i32
  }
}

</mosaic_0001>

<bundles_post_ra>
// kernel: tpu_custom_call.1
= control target key start
LH: loop header
LB: loop body
LE: loop exit
PB: predicated region body
PF: predicated region fallthrough
CT: control target
= control target key end

     0   :  { %s3411_s0 = inlined_call_operand.vmem [shape: f32[2,8,32], index: 0, kind: input, shape index: {}]   ;;  %s3412_s1 = inlined_call_operand.vmem [shape: f32[2,8,32], index: 1, kind: input, shape index: {}]   ;;  %s3413_s2 = inlined_call_operand.vmem [shape: f32[2,1,8], index: 2, kind: input, shape index: {}]   ;;  %s3414_s3 = inlined_call_operand.vmem [shape: bf16[32,96], index: 3, kind: input, shape index: {}]   ;;  %s3415_s4 = inlined_call_operand.hbm [shape: f32[1,96], index: 4, kind: input, shape index: {}]   ;;  %s3416_s5 = inlined_call_operand.hbm [shape: bf16[4,8,32], index: 5, kind: input, shape index: {}]   ;;  %s3417_s6 = inlined_call_operand.hbm [shape: f32[1,32], index: 6, kind: input, shape index: {}]   ;;  %s3418_s7 = inlined_call_operand.hbm [shape: f32[1,32], index: 7, kind: input, shape index: {}]   ;;  %s3419_s8 = inlined_call_operand.hbm [shape: f32[1,32], index: 8, kind: input, shape index: {}]   ;;  %s3420_s9 = inlined_call_operand.vmem [shape: bf16[32,64], index: 9, kind: input, shape index: {}]   ;;  %s3421_s10 = inlined_call_operand.vmem [shape: f32[1,64], index: 10, kind: input, shape index: {}]   ;;  %s3422_s11 = inlined_call_operand.vmem [shape: bf16[64,32], index: 11, kind: input, shape index: {}]   ;;  %s3423_s12 = inlined_call_operand.vmem [shape: f32[1,32], index: 12, kind: input, shape index: {}]   ;;  %s3424_s13 = inlined_call_operand.vmem [shape: f32[1,32], index: 13, kind: input, shape index: {}]   ;;  %s3425_s14 = inlined_call_operand.vmem [shape: f32[1,32], index: 14, kind: input, shape index: {}]   ;;  %s3426_s15 = inlined_call_operand.hbm [shape: f32[2,8,32], index: 15, kind: output, shape index: {0}]   ;;  %s3427_s16 = inlined_call_operand.hbm [shape: f32[2,8,32], index: 16, kind: output, shape index: {1}]  }
   0x1   :  { %3441 = sst [smem:[#allocation26_spill]] %s3411_s0 }
   0x2   :  { %3442 = sst [smem:[#allocation27_spill]] %s3424_s13 }
   0x3   :  { %3443 = sst [smem:[#allocation28_spill]] %s3425_s14 }
   0x4   :  { %3444 = sst [smem:[#allocation29_spill]] %s3426_s15 }
   0x5   :  { %3445 = sst [smem:[#allocation30_spill]] %s3427_s16 }
   0x6   :  { %22 = vsyncpa [#allocation3], 0 }
   0x7   :  { %23 = vsyncpa [#allocation6], 0 }
   0x8   :  { %24 = vsyncpa [#allocation9], 0 }
   0x9   :  { %25 = vsyncpa [#allocation4], 0 }
   0xa   :  { %27 = vsyncpa [#allocation4 + $0x1], 0 }
   0xb   :  { %28 = vsyncpa [#allocation13], 0 }
   0xc   :  { %30 = vsyncpa [#allocation13 + $0x1], 0  ;;  %s2894_s21 = smov 0   ;;  %s2896_s22 = smov 0  }
   0xd   :  { %s2898_s23 = smov 0   ;;  %s2900_s24 = smov 0  }
   0xe LB: > { %3446 = sst [smem:[#allocation19_spill]] %s2777_s21  ;;  %s2915_s25 = sadd.s32 4294967295, %s2789_s24   ;;  %s2789_s24 = sphi %s2900_s24, %s3476_s24   ;;  %s2785_s23 = sphi %s2898_s23, %s3478_s23   ;;  %s2781_s22 = sphi %s2896_s22, %s3480_s22   ;;  %s2777_s21 = sphi %s2894_s21, %s3479_s21  }
   0xf   : > { %3447 = sst [smem:[#allocation20_spill]] %s2785_s23  ;;  %s2210_s26 = sadd.s32 4294967294, %s2789_s24  }
  0x10   : > { %3448 = sst [smem:[#allocation21_spill]] %s2789_s24  ;;  %s2919_s27 = sadd.s32 1, %s2789_s24  }
  0x11   : > { %3449 = sst [smem:[#allocation22_spill]] %s2919_s27  ;;  %s373_s28 = sadd.s32 1, %s2785_s23 }
  0x12   : > { %s370_s29 = ssub.s32 %s2789_s24, %s2919_s27  ;;  %p383_p0 = scmp.ne.s32.totalorder %s2785_s23, %s2781_s22 }
  0x13   : > { %p371_p1 = scmp.eq.s32.totalorder %s370_s29, 0  ;;  %p384_p2 = scmp.eq.s32.totalorder %s2915_s25, 1 }
  0x14   : > { %p389_p3 = scmp.ne.s32.totalorder %s2781_s22, %s2777_s21  ;;  %p390_p4 = scmp.eq.s32.totalorder %s2210_s26, 1 }
  0x15   : > { %s2930_s30 = scalar_select %p371_p1, %s2785_s23, %s373_s28  }
  0x16   : > { %p2932_p5 = por %p384_p2, %p383_p0  ;;  %p2936_p6 = por %p390_p4, %p389_p3 }
  0x17   : > { %3450 = sst [smem:[#allocation23_spill]] %s2930_s30  ;;  %p2211_p7 = scmp.ge.s32.totalorder %s2789_s24, 1 }
  0x18   : > { %s3451_s0 = scalar_select %p2932_p5, 1, 0 }
  0x19   : > { %s3453_s17 = scalar_select %p2936_p6, 1, 0 }
  0x1a   : > { %3452 = sst [smem:[#allocation24_spill]] %s3451_s0  ;;  %p423_p8 = scmp.lt.s32.totalorder %s2789_s24, 3 }
  0x1b   : > { %3454 = sst [smem:[#allocation25_spill]] %s3453_s17  ;;  %p3435_p9 = scmp.eq.s32.totalorder %s2915_s25, 0 }
  0x1c   : > { %p2943_p10 = pnand %p2211_p7, %p423_p8  ;;  %s2791_s19 = smov [#allocation5]  }
  0x1d   : > { %s449_s20 = sshll.u32 %s2791_s19, 4  ;;  %s2792_s28 = smov [#allocation8]   ;;  %s2949_s20 = int_to_ptr.vmem [resolvable:$true] %s449_s20 }
  0x1e   : > { %s3455_s18 = scalar_select %p2943_p10, 1, 0 }
  0x1f   : > { %p2431_p11 = pneg %p2943_p10  ;;  %s474_s29 = sshll.u32 %s2792_s28, 4  ;;  %s2957_s29 = int_to_ptr.vmem [resolvable:$true] %s474_s29 }
  0x20   : > { %s2793_s30 = smov [#allocation2]   ;;  %s2543_s19 = scalar_lea.hbm %s3416_s5, 256 }
  0x21   : > { %p2953_p12 = pnand %p3435_p9, %p2431_p11  ;;  %s2959_s23 = sshll.u32 %s2793_s30, 4  ;;  %s440_s23 = int_to_ptr.vmem [resolvable:$true] %s2959_s23 }
  0x22   : > { %p2544_p13 = scmp.ne.s32.totalorder %s3416_s5, %s2543_s19  ;;  %p2550_p3 = scmp.lt.u32.totalorder %s2543_s19, %s3416_s5 }
  0x23   : > { %p2969_p0 = pneg %p2953_p12 }
  0x25   : > { %p2546_p1 = pnand %p2969_p0, %p2544_p13 }
  0x27   : > { %p2547_p2 = pneg %p2546_p1 }
  0x29   : > { %p2552_p4 = pnand %p2550_p3, %p2547_p2 }
  0x2b   : > { %2555 = shalt.err (!%p2552_p4)
}
  0x2c   : > { %s2556_s21 = scalar_lea.vmem %s2949_s20, 256  ;;  %p2564_p9 = scmp.lt.s32.totalorder %s2949_s20, %s2949_s20 }
  0x2d   : > { %p2557_p7 = scmp.ne.s32.totalorder %s2949_s20, %s2556_s21  ;;  %p2565_p6 = scmp.lt.s32.totalorder %s2556_s21, %s2556_s21 }
  0x2f   : > { %p2559_p8 = pnand %p2557_p7, %p2969_p0  ;;  %p2566_p13 = por %p2565_p6, %p2564_p9 }
  0x31   : > { %p2560_p11 = pneg %p2559_p8 }
  0x33   : > { %p2567_p1 = pnand %p2566_p13, %p2560_p11 }
  0x35   : > { %2570 = shalt.err (!%p2567_p1)
}
  0x36   : > { %s2794_s24 = smov 64   ;;  %s2795_s27 = smov 4  }
  0x37   : > { %2437 = dma.hbm_to_vmem [thread:$0]  (!%p2953_p12), %s3416_s5, 256, %s2949_s20, [#allocation6], %s2794_s24, %s2794_s24, %s2795_s27  }
  0x38   : > { %s2571_s14 = scalar_lea.hbm %s3418_s7, 16 }
  0x39   : > { %p2572_p6 = scmp.ne.s32.totalorder %s3418_s7, %s2571_s14  ;;  %p2578_p3 = scmp.lt.u32.totalorder %s2571_s14, %s3418_s7 }
  0x3b   : > { %p2574_p9 = pnand %p2572_p6, %p2969_p0 }
  0x3d   : > { %p2575_p2 = pneg %p2574_p9 }
  0x3f   : > { %p2580_p4 = pnand %p2578_p3, %p2575_p2 }
  0x41   : > { %2583 = shalt.err (!%p2580_p4)
}
  0x42   : > { %s2584_s20 = scalar_lea.vmem %s2957_s29, 16  ;;  %s2591_s13 = scalar_lea.vmem %s2957_s29, 32 }
  0x43   : > { %p2585_p7 = scmp.ne.s32.totalorder %s2957_s29, %s2584_s20  ;;  %p2592_p13 = scmp.lt.s32.totalorder %s2957_s29, %s2957_s29 }
  0x44   : > { %p2593_p1 = scmp.lt.s32.totalorder %s2591_s13, %s2584_s20 }
  0x45   : > { %p2587_p8 = pnand %p2585_p7, %p2969_p0 }
  0x46   : > { %p2594_p6 = por %p2593_p1, %p2592_p13 }
  0x47   : > { %p2588_p11 = pneg %p2587_p8 }
  0x49   : > { %p2595_p9 = pnand %p2594_p6, %p2588_p11 }
  0x4b   : > { %2598 = shalt.err (!%p2595_p9)
}
  0x4c   : > { %2443 = dma.hbm_to_vmem [thread:$0]  (!%p2953_p12), %s3418_s7, 16, %s2957_s29, [#allocation9]  }
  0x4d   : > { %s2599_s27 = scalar_lea.hbm %s3415_s4, 16 }
  0x4e   : > { %p2600_p2 = scmp.ne.s32.totalorder %s3415_s4, %s2599_s27  ;;  %p2606_p7 = scmp.lt.u32.totalorder %s2599_s27, %s3415_s4 }
  0x50   : > { %p2602_p3 = pnand %p2600_p2, %p2969_p0 }
  0x52   : > { %p2603_p4 = pneg %p2602_p3 }
  0x54   : > { %p2608_p8 = pnand %p2606_p7, %p2603_p4 }
  0x56   : > { %2611 = shalt.err (!%p2608_p8)
}
  0x57   : > { %s2612_s21 = scalar_lea.vmem %s440_s23, 16  ;;  %s2619_s29 = scalar_lea.vmem %s440_s23, 32 }
  0x58   : > { %p2613_p11 = scmp.ne.s32.totalorder %s440_s23, %s2612_s21  ;;  %p2620_p6 = scmp.lt.s32.totalorder %s440_s23, %s440_s23 }
  0x59   : > { %p2621_p9 = scmp.lt.s32.totalorder %s2619_s29, %s2612_s21 }
  0x5a   : > { %p2615_p13 = pnand %p2613_p11, %p2969_p0 }
  0x5b   : > { %p2622_p5 = por %p2621_p9, %p2620_p6 }
  0x5c   : > { %p2616_p1 = pneg %p2615_p13 }
  0x5e   : > { %p2623_p10 = pnand %p2622_p5, %p2616_p1 }
  0x60   : > { %2626 = shalt.err (!%p2623_p10)
}
  0x61   : > { %2434 = dma.hbm_to_vmem [thread:$0]  (!%p2953_p12), %s3415_s4, 16, %s440_s23, [#allocation3]  }
  0x62   : > { %s2796_s14 = smov [#allocation7]   ;;  %s2797_s0 = smov [#allocation10]  }
  0x63   : > { %s463_s15 = sshll.u32 %s2796_s14, 4  ;;  %s485_s24 = sshll.u32 %s2797_s0, 4  ;;  %s464_s15 = int_to_ptr.vmem [resolvable:$true] %s463_s15  ;;  %s486_s24 = int_to_ptr.vmem [resolvable:$true] %s485_s24 }
  0x64   : > { %s2627_s19 = scalar_lea.hbm %s3417_s6, 16 }
  0x65   : > { %p2628_p5 = scmp.ne.s32.totalorder %s3417_s6, %s2627_s19  ;;  %p2634_p3 = scmp.lt.u32.totalorder %s2627_s19, %s3417_s6 }
  0x67   : > { %p2630_p10 = pnand %p2628_p5, %p2969_p0 }
  0x69   : > { %p2631_p2 = pneg %p2630_p10 }
  0x6b   : > { %p2636_p4 = pnand %p2634_p3, %p2631_p2 }
  0x6d   : > { %2639 = shalt.err (!%p2636_p4)
}
  0x6e   : > { %s2640_s23 = scalar_lea.vmem %s464_s15, 16  ;;  %s2647_s20 = scalar_lea.vmem %s464_s15, 32 }
  0x6f   : > { %p2641_p7 = scmp.ne.s32.totalorder %s464_s15, %s2640_s23  ;;  %p2648_p13 = scmp.lt.s32.totalorder %s464_s15, %s464_s15 }
  0x70   : > { %p2649_p1 = scmp.lt.s32.totalorder %s2647_s20, %s2640_s23 }
  0x71   : > { %p2643_p8 = pnand %p2641_p7, %p2969_p0 }
  0x72   : > { %p2650_p6 = por %p2649_p1, %p2648_p13 }
  0x73   : > { %p2644_p11 = pneg %p2643_p8 }
  0x75   : > { %p2651_p9 = pnand %p2650_p6, %p2644_p11 }
  0x77   : > { %2654 = shalt.err (!%p2651_p9)
}
  0x78   : > { %2440 = dma.hbm_to_vmem [thread:$0]  (!%p2953_p12), %s3417_s6, 16, %s464_s15, [#allocation6]  }
  0x79   : > { %s2655_s17 = scalar_lea.hbm %s3419_s8, 16 }
  0x7a   : > { %p2656_p5 = scmp.ne.s32.totalorder %s3419_s8, %s2655_s17  ;;  %p2662_p3 = scmp.lt.u32.totalorder %s2655_s17, %s3419_s8 }
  0x7c   : > { %p2658_p10 = pnand %p2656_p5, %p2969_p0 }
  0x7e   : > { %p2659_p2 = pneg %p2658_p10 }
  0x80   : > { %p2664_p4 = pnand %p2662_p3, %p2659_p2 }
  0x82   : > { %2667 = shalt.err (!%p2664_p4)
}
  0x83   : > { %s2668_s29 = scalar_lea.vmem %s486_s24, 16  ;;  %s2675_s15 = scalar_lea.vmem %s486_s24, 32 }
  0x84   : > { %p2669_p7 = scmp.ne.s32.totalorder %s486_s24, %s2668_s29  ;;  %p2676_p13 = scmp.lt.s32.totalorder %s486_s24, %s486_s24 }
  0x85   : > { %p2677_p1 = scmp.lt.s32.totalorder %s2675_s15, %s2668_s29 }
  0x86   : > { %p2671_p8 = pnand %p2669_p7, %p2969_p0 }
  0x87   : > { %p2678_p6 = por %p2677_p1, %p2676_p13 }
  0x88   : > { %p2672_p11 = pneg %p2671_p8 }
  0x8a   : > { %p2679_p9 = pnand %p2678_p6, %p2672_p11 }
  0x8c   : > { %2682 = shalt.err (!%p2679_p9)
}
  0x8d   : > { %2446 = dma.hbm_to_vmem [thread:$0]  (!%p2953_p12), %s3419_s8, 16, %s486_s24, [#allocation9]  }
  0x8e   : > { %p3458_p5 = scmp.ne.s32.totalorder %s3455_s18, 0 }
  0x8f   : > { %p3459_p10 = scmp.eq.s32.totalorder (!%p3458_p5), %s2915_s25, 0 }
  0x90   : > { %536 = sbr.rel (%p3458_p5) target bundleno = 2476 (0x9ac), region = 80 }
  0x97   : > { %2756 = dma.done.wait (%p3459_p10), [#allocation3], 16   ;;  %p3460_p0 = pmov %p3459_p10 }
  0x99   : > { %2758 = vsyncadd (%p3460_p0), [#allocation3], 4294967280  ;;  %p3461_p2 = pmov %p3460_p0 }
  0x9a   : > { %p3462_p3 = pmov %p3460_p0 }
  0x9b   : > { %2760 = dma.done.wait (%p3461_p2), [#allocation6], 272  }
  0x9c   : > { %2762 = vsyncadd (%p3462_p3), [#allocation6], 4294967024  ;;  %p3463_p4 = pmov %p3460_p0 }
  0x9d   : > { %p3464_p12 = pmov %p3460_p0 }
  0x9e   : > { %2764 = dma.done.wait (%p3463_p4), [#allocation9], 32  }
  0x9f   : > { %2766 = vsyncadd (%p3464_p12), [#allocation9], 4294967264  ;;  %p613_p7 = scmp.lt.s32.totalorder %s2915_s25, 1  ;;  %v2798_v0 = vmov 0.0   ;;  %vm2799_vm0 = vmmov 0   ;;  %s3465_s13 = sld [smem:[#allocation26_spill]]  ;;  %v713_v18 = vlaneseq }
  0xa0   : > { %2307 = vmatprep.subr.bf16.mxu1 %v2798_v0  ;;  %2311 = vmatprep.mubr.msk.bf16.mxu1 %vm2799_vm0, %v2798_v0  ;;  %v2513_v1 = vld [vmem:[%s3414_s3] sm:$0xff]   ;;  %v2514_v2 = vld [vmem:[%s3414_s3 + $0x8] sm:$0xff]   ;;  %vm628_vm1 = vcmask 261120   ;;  %s2800_s29 = smov 104   ;;  %s2801_s15 = smov 120   ;;  %vm1152_vm2 = vcmask 64512  }
  0xa1   : > { %s3088_s16 = scalar_select %p613_p7, %s2915_s25, 1  ;;  %2321 = vmatprep.subr.bf16.mxu0 %v2798_v0  ;;  %2323 = vmatprep.mubr.msk.bf16.mxu0 %vm2799_vm0, %v2798_v0  ;;  %v2228_v7 = vld [vmem:[#allocation2] ss:$0 sm:$0xff]  ;;  %v2804_v16 = vmov 1983009808   ;;  %v714_v20 = vshrl.u32 %v713_v18, 7 }
  0xa2   : > { %2308 = vmatpush3.bf16.msra.mxu1 %v2513_v1  ;;  %s2802_s23 = smov 96   ;;  %s2803_s20 = smov 112   ;;  %v711_v17 = vunpack.c.l.s4 %v2804_v16  ;;  %v2805_v21 = vmov 1934713408   ;;  %vm1402_vm3 = vcmask 1043456   ;;  %vm1939_vm4 = vcmask 523264  }
  0xa3   : > { %s2226_s18 = sshll.u32 %s3088_s16, 3  ;;  %2309 = vmatprep.subr.bf16.mxu1 %v2798_v0  ;;  %v743_v22 = vunpack.c.l.s4 %v2805_v21  ;;  %s623_s24 = scalar_lea.vmem %s3413_s2, %s3088_s16 }
  0xa4   : > { %s620_s17 = scalar_lea.vmem %s3412_s1, %s2226_s18  ;;  %v712_v19 = vunpack.c.0.s8 %v711_v17  ;;  %s2806_s16 = smov 64  }
  0xa5   : > { %s616_s14 = scalar_lea.vmem %s3465_s13, %s2226_s18  ;;  %v626_v4 = vld [vmem:[%s620_s17] sm:$0xff]  ;;  %v744_v28 = vunpack.c.0.s8 %v743_v22  ;;  %s3321_s13 = sand.u32 1, %s2781_s22  }
  0xa6   : > { %v625_v3 = vld [vmem:[%s616_s14] sm:$0xff]  ;;  %2310 = vmatpush3.bf16.msra.mxu1 %v2514_v2  ;;  %v3134_v25 = vsub.s32 %v712_v19, %v714_v20  ;;  %s2268_s14 = sshll.u32 %s2915_s25, 7  ;;  %s2224_s0 = sshll.u32 %s3321_s13, 3 }
  0xa7   : > { %v3107_v5 = vadd.f32 %v626_v4, %v625_v3  ;;  %2315 = vmatprep.subr.bf16.mxu1 %v2798_v0  ;;  %v3144_v35 = vsub.s32 %v744_v28, %v714_v20  ;;  %s3467_s19 = sld [smem:[#allocation29_spill]]  ;;  %s605_s30 = scalar_lea.vmem [#allocation11], %s2224_s0 }
  0xa8   : > { %s2035_s21 = sshll.u32 %s605_s30, 4  ;;  %s2036_s21 = int_to_ptr.vmem [resolvable:$true] %s2035_s21 }
  0xa9   : > { %v631_v6 = vpack.c.bf16 %v3107_v5, %v3107_v5  ;;  %629 = vst.msk [vmem:[%s605_s30] sm:$0xff] %vm628_vm1, %v3107_v5 }
  0xab   : > { %2312 = vmatmul.mubr.msk.bf16.vlgmr.msra.gmra.mrb[0].mxu1 %vm628_vm1, %v631_v6 }
  0xac   : > { %2317 = vmatprep.mubr.msk.bf16.mxu1 %vm2799_vm0, %v2798_v0 }
  0xad   : > { %s3330_s28 = scalar_lea.hbm %s3467_s19, %s2268_s14 }
 0x17e   : > { %v692_v8 = vpop.f32.mrb[0].mxu1 }
 0x17f   : > { %v3115_v9 = vadd.f32 %v2228_v7, %v692_v8  ;;  %v2313_v10 = vpop.f32.mrb[1].mxu1 }
 0x180   : > { %v695_v11 = vpop.f32.mrb[2].mxu1 }
 0x181   : > { %705 = vrot.lane.b32.xlu1 %v3115_v9, %s2800_s29  ;;  %699 = vrot.lane.b32.xlu0 %v3115_v9, %s2801_s15  ;;  %v2314_v12 = vpop.f32.mrb[3].mxu1  ;;  %s2017_s29 = scalar_lea.sflag [#allocation4], %s3321_s13  ;;  %s2683_s15 = scalar_lea.vmem %s2036_s21, 128 }
 0x182   : > { %p2684_p8 = scmp.ne.s32.totalorder %s2036_s21, %s2683_s15 }
 0x185   : > { %848 = vrot.lane.b32.xlu1 %v3115_v9, %s2802_s23  ;;  %702 = vrot.lane.b32.xlu0 %v3115_v9, %s2803_s20 }
 0x1f3   : > { %v3121_v13 = vpop.permute.xlu0 %699  ;;  %v3124_v14 = vpop.permute.xlu1 %705 }
 0x1f4   : > { %850 = vrot.lane.b32.xlu0 %v3121_v13, %s2802_s23  ;;  %v724_v26 = vcombine.low %v3121_v13, %v3124_v14  ;;  %v725_v27 = vcombine.high %v3121_v13, %v3124_v14 }
 0x1f6   : > { %v732_v31 = vrot.slane %v724_v26, %v3134_v25  ;;  %v739_v32 = vrot.slane %v725_v27, %v3134_v25 }
 0x1f7   : > { %v3126_v15 = vpop.permute.xlu0 %702  ;;  %v849_v33 = vpop.permute.xlu1 %848 }
 0x1f8   : > { %854 = vrot.lane.b32.xlu0 %v3124_v14, %s2802_s23  ;;  %852 = vrot.lane.b32.xlu1 %v3126_v15, %s2802_s23  ;;  %v708_v23 = vcombine.low %v3115_v9, %v3126_v15  ;;  %v709_v24 = vcombine.high %v3115_v9, %v3126_v15  ;;  %s2807_s23 = smov [#allocation11]  }
 0x1f9   : > { %s2687_s20 = sshll.u32 %s2807_s23, 4  ;;  %s2688_s20 = int_to_ptr.vmem [resolvable:$false] %s2687_s20 }
 0x1fa   : > { %v716_v29 = vrot.slane %v708_v23, %v3134_v25  ;;  %v723_v30 = vrot.slane %v709_v24, %v3134_v25  ;;  %s2689_s18 = scalar_lea.vmem %s2688_s20, 256  ;;  %p2690_p6 = scmp.lt.s32.totalorder %s2036_s21, %s2688_s20 }
 0x1fb   : > { %p2691_p9 = scmp.lt.s32.totalorder %s2689_s18, %s2683_s15 }
 0x1fc   : > { %v740_v36 = vcombine.low %v716_v29, %v732_v31  ;;  %v741_v37 = vcombine.high %v716_v29, %v732_v31  ;;  %v756_v38 = vcombine.low %v723_v30, %v739_v32  ;;  %v757_v39 = vcombine.high %v723_v30, %v739_v32 }
 0x1fd   : > { %p2692_p5 = por %p2691_p9, %p2690_p6 }
 0x1fe   : > { %v748_v46 = vrot.slane %v740_v36, %v3144_v35  ;;  %v755_v47 = vrot.slane %v741_v37, %v3144_v35  ;;  %v764_v48 = vrot.slane %v756_v38, %v3144_v35  ;;  %v771_v49 = vrot.slane %v757_v39, %v3144_v35 }
 0x200   : > { %v776_v58 = vcombine.low %v748_v46, %v755_v47  ;;  %v2232_v59 = vcombine.high %v748_v46, %v755_v47  ;;  %v792_v60 = vcombine.low %v764_v48, %v771_v49  ;;  %v2233_v61 = vcombine.high %v764_v48, %v771_v49 }
 0x202   : > { %v783_v8 = vrot.slane %v776_v58, %v3134_v25  ;;  %v791_v10 = vrot.slane %v2232_v59, %v3134_v25  ;;  %v799_v11 = vrot.slane %v792_v60, %v3134_v25  ;;  %v807_v12 = vrot.slane %v2233_v61, %v3134_v25  ;;  %v2242_v60 = vld [vmem:[%s623_s24] ss:$0 sm:$0xff] }
 0x204   : > { %v808_v27 = vcombine.low %v783_v8, %v791_v10  ;;  %v824_v28 = vcombine.low %v799_v11, %v807_v12 }
 0x206   : > { %v816_v36 = vrot.slane %v808_v27, %v3144_v35  ;;  %v832_v37 = vrot.slane %v824_v28, %v3144_v35 }
 0x266   : > { %v851_v34 = vpop.permute.xlu0 %850 }
 0x26a   : > { %v853_v40 = vpop.permute.xlu1 %852  ;;  %v855_v41 = vpop.permute.xlu0 %854 }
 0x26b   : > { %v860_v42 = vcombine.low %v849_v33, %v853_v40  ;;  %v861_v43 = vcombine.high %v849_v33, %v853_v40  ;;  %v876_v44 = vcombine.low %v851_v34, %v855_v41  ;;  %v877_v45 = vcombine.high %v851_v34, %v855_v41 }
 0x26d   : > { %v868_v50 = vrot.slane %v860_v42, %v3134_v25  ;;  %v875_v51 = vrot.slane %v861_v43, %v3134_v25  ;;  %v884_v52 = vrot.slane %v876_v44, %v3134_v25  ;;  %v891_v53 = vrot.slane %v877_v45, %v3134_v25 }
 0x26e   : > { %v809_v42 = vcombine.high %v783_v8, %v791_v10  ;;  %v840_v43 = vcombine.low %v816_v36, %v832_v37  ;;  %v841_v44 = vcombine.high %v816_v36, %v832_v37  ;;  %v825_v45 = vcombine.high %v799_v11, %v807_v12 }
 0x26f   : > { %v892_v54 = vcombine.low %v868_v50, %v884_v52  ;;  %v893_v55 = vcombine.high %v868_v50, %v884_v52  ;;  %v908_v56 = vcombine.low %v875_v51, %v891_v53  ;;  %v909_v57 = vcombine.high %v875_v51, %v891_v53 }
 0x270   : > { %v844_v48 = vpack.c.bf16 %v840_v43, %v840_v43  ;;  %v845_v49 = vpack.c.bf16 %v841_v44, %v841_v44  ;;  %v823_v50 = vrot.slane %v809_v42, %v3144_v35  ;;  %v839_v51 = vrot.slane %v825_v45, %v3144_v35 }
 0x271   : > { %v900_v62 = vrot.slane %v892_v54, %v3144_v35  ;;  %v907_v63 = vrot.slane %v893_v55, %v3144_v35  ;;  %v916_v1 = vrot.slane %v908_v56, %v3144_v35  ;;  %v923_v2 = vrot.slane %v909_v57, %v3144_v35 }
 0x272   : > { %v842_v54 = vcombine.low %v823_v50, %v839_v51  ;;  %v843_v55 = vcombine.high %v823_v50, %v839_v51 }
 0x273   : > { %v928_v3 = vcombine.low %v900_v62, %v907_v63  ;;  %v2234_v4 = vcombine.high %v900_v62, %v907_v63  ;;  %v944_v6 = vcombine.low %v916_v1, %v923_v2  ;;  %v2235_v7 = vcombine.high %v916_v1, %v923_v2 }
 0x274   : > { %v846_v56 = vpack.c.bf16 %v842_v54, %v842_v54  ;;  %v847_v57 = vpack.c.bf16 %v843_v55, %v843_v55 }
 0x275   : > { %v935_v16 = vrot.slane %v928_v3, %v3134_v25  ;;  %v943_v17 = vrot.slane %v2234_v4, %v3134_v25  ;;  %v951_v18 = vrot.slane %v944_v6, %v3134_v25  ;;  %v959_v19 = vrot.slane %v2235_v7, %v3134_v25 }
 0x277   : > { %v960_v20 = vcombine.low %v935_v16, %v943_v17  ;;  %v976_v21 = vcombine.low %v951_v18, %v959_v19  ;;  %v961_v22 = vcombine.high %v935_v16, %v943_v17  ;;  %v977_v23 = vcombine.high %v951_v18, %v959_v19 }
 0x279   : > { %v968_v24 = vrot.slane %v960_v20, %v3144_v35  ;;  %v984_v26 = vrot.slane %v976_v21, %v3144_v35  ;;  %v975_v31 = vrot.slane %v961_v22, %v3144_v35  ;;  %v991_v32 = vrot.slane %v977_v23, %v3144_v35 }
 0x27b   : > { %v992_v29 = vcombine.low %v968_v24, %v984_v26  ;;  %v993_v30 = vcombine.high %v968_v24, %v984_v26  ;;  %v994_v40 = vcombine.low %v975_v31, %v991_v32  ;;  %v995_v41 = vcombine.high %v975_v31, %v991_v32 }
 0x27d   : > { %v996_v33 = vpack.c.bf16 %v992_v29, %v992_v29  ;;  %v997_v34 = vpack.c.bf16 %v993_v30, %v993_v30  ;;  %v998_v46 = vpack.c.bf16 %v994_v40, %v994_v40  ;;  %v999_v47 = vpack.c.bf16 %v995_v41, %v995_v41 }
 0x27f   : > { %v1157_v38 = vsel %vm1152_vm2, %v996_v33, 0  ;;  %v1203_v39 = vsel %vm1152_vm2, %v997_v34, 0  ;;  %v1249_v52 = vsel %vm1152_vm2, %v998_v46, 0  ;;  %v1295_v53 = vsel %vm1152_vm2, %v999_v47, 0 }
 0x280   : > { %2316 = vmatpush3.bf16.xpose.msra.mxu1 %v1157_v38  ;;  %2322 = vmatpush3.bf16.xpose.msra.mxu0 %v1203_v39 }
 0x281   : > { %2327 = vmatprep.subr.bf16.mxu1 %v2798_v0  ;;  %2333 = vmatprep.subr.bf16.mxu0 %v2798_v0 }
 0x287   : > { %2318 = vmatmul.mubr.msk.bf16.vlgmr.msra.gmra.mrb[4].mxu1 %vm1152_vm2, %v844_v48  ;;  %2324 = vmatmul.mubr.msk.bf16.vlgmr.msra.gmra.mrb[0].mxu0 %vm1152_vm2, %v845_v49 }
 0x288   : > { %2328 = vmatpush3.bf16.xpose.msra.mxu1 %v1249_v52  ;;  %2334 = vmatpush3.bf16.xpose.msra.mxu0 %v1295_v53 }
 0x289   : > { %2329 = vmatprep.mubr.msk.bf16.mxu1 %vm2799_vm0, %v2798_v0  ;;  %2335 = vmatprep.mubr.msk.bf16.mxu0 %vm2799_vm0, %v2798_v0 }
 0x28a   : > { %2339 = vmatprep.subr.bf16.mxu1 %v2798_v0  ;;  %2345 = vmatprep.subr.bf16.mxu0 %v2798_v0 }
 0x28f   : > { %2330 = vmatmul.mubr.msk.bf16.vlgmr.msra.gmra.mrb[8].mxu1 %vm1152_vm2, %v846_v56  ;;  %2336 = vmatmul.mubr.msk.bf16.vlgmr.msra.gmra.mrb[4].mxu0 %vm1152_vm2, %v847_v57 }
 0x290   : > { %2341 = vmatprep.mubr.msk.bf16.mxu1 %vm2799_vm0, %v2798_v0  ;;  %2347 = vmatprep.mubr.msk.bf16.mxu0 %vm2799_vm0, %v2798_v0 }
 0x35a   : > { %v1193_v58 = vpop.f32.mrb[4].mxu1  ;;  %v1239_v59 = vpop.f32.mrb[0].mxu0 }
 0x35b   : > { %v1337_v61 = vmul.f32 0.35355338, %v1193_v58  ;;  %v1338_v62 = vmul.f32 0.35355338, %v1239_v59  ;;  %v2319_v63 = vpop.f32.mrb[5].mxu1  ;;  %v2325_v1 = vpop.f32.mrb[1].mxu0 }
 0x35c   : > { %v1196_v2 = vpop.f32.mrb[6].mxu1  ;;  %v1242_v3 = vpop.f32.mrb[2].mxu0 }
 0x35d   : > { %v2320_v4 = vpop.f32.mrb[7].mxu1  ;;  %v2326_v6 = vpop.f32.mrb[3].mxu0  ;;  %v1348_v7 = vadd.f32 %v2242_v60, %v1338_v62  ;;  %v1347_v8 = vadd.f32 %v2242_v60, %v1337_v61 }
 0x35f   : > { %v1354_v10 = vsel %vm1152_vm2, %v1348_v7, -inf  ;;  %v1351_v11 = vsel %vm1152_vm2, %v1347_v8, -inf }
 0x360   : > { %1355 = vmax.xlane.f32.xlu0 %v1354_v10  ;;  %1352 = vmax.xlane.f32.xlu1 %v1351_v11 }
 0x362   : > { %v1285_v12 = vpop.f32.mrb[8].mxu1  ;;  %v1331_v16 = vpop.f32.mrb[4].mxu0 }
 0x363   : > { %v1339_v17 = vmul.f32 0.35355338, %v1285_v12  ;;  %v1340_v18 = vmul.f32 0.35355338, %v1331_v16  ;;  %v2331_v19 = vpop.f32.mrb[9].mxu1  ;;  %v2337_v20 = vpop.f32.mrb[5].mxu0 }
 0x364   : > { %v1288_v21 = vpop.f32.mrb[10].mxu1  ;;  %v1334_v22 = vpop.f32.mrb[6].mxu0 }
 0x365   : > { %v2332_v23 = vpop.f32.mrb[11].mxu1  ;;  %v2338_v24 = vpop.f32.mrb[7].mxu0  ;;  %v1350_v26 = vadd.f32 %v2242_v60, %v1340_v18  ;;  %v1349_v27 = vadd.f32 %v2242_v60, %v1339_v17 }
 0x367   : > { %v1360_v28 = vsel %vm1152_vm2, %v1350_v26, -inf  ;;  %v1357_v29 = vsel %vm1152_vm2, %v1349_v27, -inf }
 0x368   : > { %1361 = vmax.xlane.f32.xlu1 %v1360_v28  ;;  %1358 = vmax.xlane.f32.xlu0 %v1357_v29 }
 0x379   : > { %1002 = vrot.lane.b32.xlu1 %v3121_v13, %s2806_s16 }
 0x37e   : > { %1000 = vrot.lane.b32.xlu0 %v3115_v9, %s2806_s16 }
 0x3ed   : > { %v1356_v30 = vpop.xlane.xlu0 %1355  ;;  %v1353_v31 = vpop.xlane.xlu1 %1352 }
 0x3ee   : > { %v1364_v32 = vsub.f32 %v1348_v7, %v1356_v30  ;;  %v1363_v33 = vsub.f32 %v1347_v8, %v1353_v31 }
 0x3f0   : > { %v1369_v34 = vmul.f32 1.442695, %v1364_v32  ;;  %v1367_v36 = vmul.f32 1.442695, %v1363_v33 }
 0x3f2   : > { %2521 = vpow2.f32 %v1369_v34 }
 0x3f3   : > { %2523 = vpow2.f32 %v1367_v36 }
 0x3f5   : > { %v1359_v9 = vpop.xlane.xlu0 %1358  ;;  %v1362_v40 = vpop.xlane.xlu1 %1361 }
 0x3f6   : > { %v1365_v41 = vsub.f32 %v1349_v27, %v1359_v9  ;;  %v1366_v42 = vsub.f32 %v1350_v26, %v1362_v40 }
 0x3f8   : > { %v1371_v43 = vmul.f32 1.442695, %v1365_v41  ;;  %v1373_v44 = vmul.f32 1.442695, %v1366_v42 }
 0x3f9   : > { %v1001_v48 = vpop.permute.xlu0 %1000 }
 0x3fa   : > { %2525 = vpow2.f32 %v1371_v43 }
 0x3fb   : > { %2527 = vpow2.f32 %v1373_v44 }
 0x3fc   : > { %v3204_v37 = vpop.eup %2521 }
 0x3fd   : > { %v3206_v38 = vpop.eup %2523  ;;  %v1378_v39 = vsel %vm1152_vm2, %v3204_v37, 0.0 }
 0x3fe   : > { %1379 = vadd.xlane.f32.xlu1 %v1378_v39  ;;  %v1375_v13 = vsel %vm1152_vm2, %v3206_v38, 0.0 }
 0x3ff   : > { %1376 = vadd.xlane.f32.xlu0 %v1375_v13 }
 0x404   : > { %v3214_v45 = vpop.eup %2525 }
 0x405   : > { %v3216_v46 = vpop.eup %2527  ;;  %v1381_v47 = vsel %vm1152_vm2, %v3214_v45, 0.0 }
 0x40f   : > { %1004 = vrot.lane.b32.xlu1 %v3126_v15, %s2806_s16  ;;  %v1384_v15 = vsel %vm1152_vm2, %v3216_v46, 0.0 }
 0x415   : > { %1006 = vrot.lane.b32.xlu0 %v3124_v14, %s2806_s16  ;;  %v1003_v14 = vpop.permute.xlu1 %1002  ;;  %s3466_s16 = sld [smem:[#allocation24_spill]] }
 0x41b   : > { %p3468_p11 = scmp.ne.s32.totalorder %s3466_s16, 0 }
 0x41d   : > { %p2685_p13 = pnand %p2684_p8, %p3468_p11 }
 0x41f   : > { %p2686_p1 = pneg %p2685_p13 }
 0x421   : > { %p2693_p10 = pnand %p2692_p5, %p2686_p1 }
 0x433   : > { %1382 = vadd.xlane.f32.xlu1 %v1381_v47 }
 0x434   : > { %1385 = vadd.xlane.f32.xlu0 %v1384_v15 }
 0x48b   : > { %v1380_v49 = vpop.xlane.xlu1 %1379 }
 0x48c   : > { %v1377_v50 = vpop.xlane.xlu0 %1376  ;;  %2529 = vrcp.f32 %v1380_v49 }
 0x48d   : > { %2531 = vrcp.f32 %v1377_v50 }
 0x48f   : > { %v1005_v51 = vpop.permute.xlu1 %1004 }
 0x490   : > { %v1012_v52 = vcombine.low %v1001_v48, %v1005_v51  ;;  %v1013_v53 = vcombine.high %v1001_v48, %v1005_v51  ;;  %v1007_v54 = vpop.permute.xlu0 %1006  ;;  %v1588_v51 = vld [vmem:[#allocation5] sm:$0xf] }
 0x491   : > { %v1028_v55 = vcombine.low %v1003_v14, %v1007_v54  ;;  %v1029_v56 = vcombine.high %v1003_v14, %v1007_v54  ;;  %v1591_v54 = vld [vmem:[#allocation5 + $0xc] sm:$0xf] }
 0x492   : > { %v1020_v57 = vrot.slane %v1012_v52, %v3134_v25  ;;  %v1027_v58 = vrot.slane %v1013_v53, %v3134_v25  ;;  %v1589_v52 = vld [vmem:[#allocation5 + $0x4] sm:$0xf]  ;;  %v1596_v53 = vsel %vm1402_vm3, %v1588_v51, 0 }
 0x493   : > { %v1036_v59 = vrot.slane %v1028_v55, %v3134_v25  ;;  %v1043_v60 = vrot.slane %v1029_v56, %v3134_v25 }
 0x495   : > { %v1044_v61 = vcombine.low %v1020_v57, %v1036_v59  ;;  %v1045_v62 = vcombine.high %v1020_v57, %v1036_v59  ;;  %v1060_v63 = vcombine.low %v1027_v58, %v1043_v60  ;;  %v1061_v1 = vcombine.high %v1027_v58, %v1043_v60 }
 0x496   : > { %v2530_v26 = vpop.eup %2529 }
 0x497   : > { %v1052_v2 = vrot.slane %v1044_v61, %v3144_v35  ;;  %v1059_v3 = vrot.slane %v1045_v62, %v3144_v35  ;;  %v1068_v4 = vrot.slane %v1060_v63, %v3144_v35  ;;  %v1075_v6 = vrot.slane %v1061_v1, %v3144_v35  ;;  %v2532_v29 = vpop.eup %2531 }
 0x498   : > { %v1391_v34 = vmul.f32 %v2532_v29, %v3206_v38  ;;  %v1734_v62 = vsel %vm1402_vm3, %v1591_v54, 0 }
 0x499   : > { %v1080_v7 = vcombine.low %v1052_v2, %v1059_v3  ;;  %v2236_v8 = vcombine.high %v1052_v2, %v1059_v3  ;;  %v1096_v10 = vcombine.low %v1068_v4, %v1075_v6  ;;  %v2237_v11 = vcombine.high %v1068_v4, %v1075_v6 }
 0x49b   : > { %v1087_v12 = vrot.slane %v1080_v7, %v3134_v25  ;;  %v1095_v16 = vrot.slane %v2236_v8, %v3134_v25  ;;  %v1103_v17 = vrot.slane %v1096_v10, %v3134_v25  ;;  %v1111_v18 = vrot.slane %v2237_v11, %v3134_v25 }
 0x49c   : > { %v1392_v25 = vmul.f32 %v2530_v26, %v3204_v37 }
 0x49d   : > { %v1112_v19 = vcombine.low %v1087_v12, %v1095_v16  ;;  %v1113_v20 = vcombine.high %v1087_v12, %v1095_v16  ;;  %v1128_v21 = vcombine.low %v1103_v17, %v1111_v18  ;;  %v1129_v22 = vcombine.high %v1103_v17, %v1111_v18 }
 0x49e   : > { %v1396_v42 = vpack.c.bf16 %v1392_v25, %v1392_v25 }
 0x49f   : > { %v1120_v23 = vrot.slane %v1112_v19, %v3144_v35  ;;  %v1127_v24 = vrot.slane %v1113_v20, %v3144_v35  ;;  %v1136_v27 = vrot.slane %v1128_v21, %v3144_v35  ;;  %v1143_v28 = vrot.slane %v1129_v22, %v3144_v35 }
 0x4a0   : > { %v1395_v35 = vpack.c.bf16 %v1391_v34, %v1391_v34 }
 0x4a1   : > { %v1144_v30 = vcombine.low %v1120_v23, %v1136_v27  ;;  %v1145_v31 = vcombine.high %v1120_v23, %v1136_v27  ;;  %v1146_v32 = vcombine.low %v1127_v24, %v1143_v28  ;;  %v1147_v33 = vcombine.high %v1127_v24, %v1143_v28 }
 0x4a3   : > { %v1148_v36 = vpack.c.bf16 %v1144_v30, %v1144_v30  ;;  %v1149_v39 = vpack.c.bf16 %v1145_v31, %v1145_v31  ;;  %v1150_v40 = vpack.c.bf16 %v1146_v32, %v1146_v32  ;;  %v1151_v41 = vpack.c.bf16 %v1147_v33, %v1147_v33 }
 0x4a5   : > { %v1404_v13 = vsel %vm1402_vm3, %v1148_v36, 0  ;;  %v1450_v9 = vsel %vm1402_vm3, %v1149_v39, 0  ;;  %v1496_v37 = vsel %vm1402_vm3, %v1150_v40, 0  ;;  %v1542_v38 = vsel %vm1402_vm3, %v1151_v41, 0 }
 0x4a6   : > { %2340 = vmatpush3.bf16.msra.mxu1 %v1404_v13  ;;  %2346 = vmatpush3.bf16.msra.mxu0 %v1450_v9  ;;  %v2251_v9 = vld [vmem:[#allocation7] ss:$0 sm:$0xff] }
 0x4a7   : > { %2351 = vmatprep.subr.bf16.mxu1 %v2798_v0  ;;  %2357 = vmatprep.subr.bf16.mxu0 %v2798_v0 }
 0x4a9   : > { %2342 = vmatmul.mubr.msk.bf16.vlgmr.msra.gmra.mrb[12].mxu1 %vm1152_vm2, %v1395_v35  ;;  %2348 = vmatmul.mubr.msk.bf16.vlgmr.msra.gmra.mrb[8].mxu0 %vm1152_vm2, %v1396_v42 }
 0x4aa   : > { %2352 = vmatpush3.bf16.msra.mxu1 %v1496_v37  ;;  %2358 = vmatpush3.bf16.msra.mxu0 %v1542_v38 }
 0x4ab   : > { %2353 = vmatprep.mubr.msk.bf16.mxu1 %vm2799_vm0, %v2798_v0  ;;  %2359 = vmatprep.mubr.msk.bf16.mxu0 %vm2799_vm0, %v2798_v0 }
 0x4ac   : > { %2363 = vmatprep.subr.bf16.mxu1 %v2798_v0  ;;  %2369 = vmatprep.subr.bf16.mxu0 %v2798_v0 }
 0x4c0   : > { %v1383_v43 = vpop.xlane.xlu1 %1382 }
 0x4c1   : > { %2533 = vrcp.f32 %v1383_v43  ;;  %v1386_v44 = vpop.xlane.xlu0 %1385 }
 0x4c2   : > { %2535 = vrcp.f32 %v1386_v44 }
 0x4cb   : > { %v2534_v47 = vpop.eup %2533 }
 0x4cc   : > { %v2536_v15 = vpop.eup %2535  ;;  %v1393_v14 = vmul.f32 %v2534_v47, %v3214_v45  ;;  %v1642_v45 = vsel %vm1402_vm3, %v1589_v52, 0 }
 0x4cd   : > { %v1394_v48 = vmul.f32 %v2536_v15, %v3216_v46  ;;  %v1590_v46 = vld [vmem:[#allocation5 + $0x8] sm:$0xf]  ;;  %v2515_v15 = vld [vmem:[%s3420_s9] sm:$0xff]  }
 0x4ce   : > { %v1397_v49 = vpack.c.bf16 %v1393_v14, %v1393_v14  ;;  %v1688_v61 = vsel %vm1402_vm3, %v1590_v46, 0  ;;  %v2516_v14 = vld [vmem:[%s3420_s9 + $0x8] sm:$0xff]  }
 0x4cf   : > { %v1398_v50 = vpack.c.bf16 %v1394_v48, %v1394_v48 }
 0x4d0   : > { %2354 = vmatmul.mubr.msk.bf16.vlgmr.msra.gmra.mrb[16].mxu1 %vm1152_vm2, %v1397_v49 }
 0x4d1   : > { %2360 = vmatmul.mubr.msk.bf16.vlgmr.msra.gmra.mrb[12].mxu0 %vm1152_vm2, %v1398_v50  ;;  %2365 = vmatprep.mubr.msk.bf16.mxu1 %vm2799_vm0, %v2798_v0 }
 0x4d2   : > { %2371 = vmatprep.mubr.msk.bf16.mxu0 %vm2799_vm0, %v2798_v0  ;;  %2364 = vmatpush3.bf16.msra.mxu1 %v1596_v53 }
 0x4d3   : > { %2370 = vmatpush3.bf16.msra.mxu0 %v1642_v45  ;;  %2375 = vmatprep.subr.bf16.mxu1 %v2798_v0 }
 0x4d4   : > { %2381 = vmatprep.subr.bf16.mxu0 %v2798_v0 }
 0x57c   : > { %v1440_v55 = vpop.f32.mrb[12].mxu1  ;;  %v1486_v56 = vpop.f32.mrb[8].mxu0 }
 0x57d   : > { %v1584_v57 = vpack.c.bf16 %v1440_v55, %v1440_v55  ;;  %v1585_v58 = vpack.c.bf16 %v1486_v56, %v1486_v56  ;;  %v2343_v59 = vpop.f32.mrb[13].mxu1  ;;  %v2349_v60 = vpop.f32.mrb[9].mxu0  ;;  %v2252_v55 = vld [vmem:[#allocation8] ss:$0 sm:$0xff] }
 0x57e   : > { %v1443_v63 = vpop.f32.mrb[14].mxu1  ;;  %v1489_v1 = vpop.f32.mrb[10].mxu0 }
 0x57f   : > { %v2344_v2 = vpop.f32.mrb[15].mxu1  ;;  %v2350_v3 = vpop.f32.mrb[11].mxu0  ;;  %2366 = vmatmul.mubr.msk.bf16.vlgmr.msra.gmra.mrb[20].mxu1 %vm1152_vm2, %v1584_v57  ;;  %2372 = vmatmul.mubr.msk.bf16.vlgmr.msra.gmra.mrb[16].mxu0 %vm1152_vm2, %v1585_v58  ;;  %v2253_v57 = vld [vmem:[#allocation10] ss:$0 sm:$0xff]  ;;  %v2520_v1 = vld [vmem:[%s3422_s11 + $0x18] sm:$0xff]  }
 0x580   : > { %2376 = vmatpush3.bf16.msra.mxu1 %v1688_v61  ;;  %2382 = vmatpush3.bf16.msra.mxu0 %v1734_v62  ;;  %v2517_v61 = vld [vmem:[%s3422_s11] sm:$0xff]   ;;  %v2518_v62 = vld [vmem:[%s3422_s11 + $0x8] sm:$0xff]   ;;  %v2519_v63 = vld [vmem:[%s3422_s11 + $0x10] sm:$0xff]  }
 0x581   : > { %2377 = vmatprep.mubr.msk.bf16.mxu1 %vm2799_vm0, %v2798_v0  ;;  %2383 = vmatprep.mubr.msk.bf16.mxu0 %vm2799_vm0, %v2798_v0  ;;  %v2254_v2 = vld [vmem:[%s3421_s10] ss:$0 sm:$0xff] }
 0x582   : > { %2387 = vmatprep.subr.bf16.mxu1 %v2798_v0  ;;  %2395 = vmatprep.subr.bf16.mxu0 %v2798_v0 }
 0x5a3   : > { %v1532_v4 = vpop.f32.mrb[16].mxu1 }
 0x5a4   : > { %v1586_v6 = vpack.c.bf16 %v1532_v4, %v1532_v4  ;;  %v1578_v7 = vpop.f32.mrb[12].mxu0  ;;  %v2355_v8 = vpop.f32.mrb[17].mxu1 }
 0x5a5   : > { %v1587_v10 = vpack.c.bf16 %v1578_v7, %v1578_v7  ;;  %v2361_v11 = vpop.f32.mrb[13].mxu0  ;;  %v1535_v12 = vpop.f32.mrb[18].mxu1 }
 0x5a6   : > { %v1581_v16 = vpop.f32.mrb[14].mxu0  ;;  %v2356_v17 = vpop.f32.mrb[19].mxu1  ;;  %2378 = vmatmul.mubr.msk.bf16.vlgmr.msra.gmra.mrb[24].mxu1 %vm1152_vm2, %v1586_v6 }
 0x5a7   : > { %v2362_v18 = vpop.f32.mrb[15].mxu0  ;;  %2384 = vmatmul.mubr.msk.bf16.vlgmr.msra.gmra.mrb[20].mxu0 %vm1152_vm2, %v1587_v10  ;;  %2391 = vmatprep.mubr.msk.bf16.mxu1 %vm2799_vm0, %v2798_v0 }
 0x5a8   : > { %2403 = vmatprep.mubr.msk.bf16.mxu0 %vm2799_vm0, %v2798_v0  ;;  %2388 = vmatpush3.bf16.msra.mxu1 %v2515_v15 }
 0x5a9   : > { %2389 = vmatprep.subr.bf16.mxu1 %v2798_v0  ;;  %2396 = vmatpush3.bf16.msra.mxu0 %v2517_v61 }
 0x5aa   : > { %2397 = vmatprep.subr.bf16.mxu0 %v2798_v0 }
 0x5ac   : > { %2390 = vmatpush3.bf16.msra.mxu1 %v2516_v14 }
 0x5ad   : > { %2398 = vmatpush3.bf16.msra.mxu0 %v2518_v62 }
 0x5ae   : > { %2399 = vmatprep.subr.bf16.mxu0 %v2798_v0 }
 0x5b1   : > { %2400 = vmatpush3.bf16.msra.mxu0 %v2519_v63 }
 0x5b2   : > { %2401 = vmatprep.subr.bf16.mxu0 %v2798_v0 }
 0x5b5   : > { %2402 = vmatpush3.bf16.msra.mxu0 %v2520_v1 }
 0x652   : > { %v1632_v19 = vpop.f32.mrb[20].mxu1  ;;  %v1678_v20 = vpop.f32.mrb[16].mxu0 }
 0x653   : > { %v1776_v21 = vsel %vm628_vm1, %v1632_v19, 0.0  ;;  %v1777_v22 = vsel %vm628_vm1, %v1678_v20, 0.0  ;;  %v2367_v23 = vpop.f32.mrb[21].mxu1  ;;  %v2373_v24 = vpop.f32.mrb[17].mxu0 }
 0x654   : > { %v1778_v26 = vadd.f32 %v1777_v22, %v1776_v21  ;;  %v1635_v27 = vpop.f32.mrb[22].mxu1  ;;  %v1681_v28 = vpop.f32.mrb[18].mxu0  ;;  %v2258_v22 = vld [vmem:[%s3423_s12] ss:$0 sm:$0xff] }
 0x655   : > { %v2368_v29 = vpop.f32.mrb[23].mxu1  ;;  %v2374_v30 = vpop.f32.mrb[19].mxu0 }
 0x679   : > { %v1724_v31 = vpop.f32.mrb[24].mxu1 }
 0x67a   : > { %v1779_v32 = vsel %vm628_vm1, %v1724_v31, 0.0  ;;  %v1770_v33 = vpop.f32.mrb[20].mxu0  ;;  %v2379_v25 = vpop.f32.mrb[25].mxu1 }
 0x67b   : > { %v1780_v34 = vadd.f32 %v1779_v32, %v1778_v26  ;;  %v2385_v36 = vpop.f32.mrb[21].mxu0  ;;  %v1727_v39 = vpop.f32.mrb[26].mxu1  ;;  %v1781_v13 = vsel %vm628_vm1, %v1770_v33, 0.0 }
 0x67c   : > { %v1773_v40 = vpop.f32.mrb[22].mxu0  ;;  %v2380_v41 = vpop.f32.mrb[27].mxu1 }
 0x67d   : > { %v1782_v35 = vadd.f32 %v1781_v13, %v1780_v34  ;;  %v2386_v42 = vpop.f32.mrb[23].mxu0 }
 0x67f   : > { %v1790_v37 = vadd.f32 %v2251_v9, %v1782_v35 }
 0x681   : > { %v1791_v38 = vadd.f32 %v1790_v37, %v3107_v5 }
 0x683   : > { %v1794_v43 = vsel %vm628_vm1, %v1791_v38, 0.0  ;;  %v1797_v44 = vmul.f32 %v1791_v38, %v1791_v38 }
 0x684   : > { %1795 = vadd.xlane.f32.xlu0 %v1794_v43 }
 0x685   : > { %v1798_v47 = vsel %vm628_vm1, %v1797_v44, 0.0 }
 0x686   : > { %1799 = vadd.xlane.f32.xlu1 %v1798_v47 }
 0x711   : > { %v1796_v48 = vpop.xlane.xlu0 %1795 }
 0x712   : > { %v1801_v49 = vmul.f32 0.03125, %v1796_v48 }
 0x713   : > { %v1800_v50 = vpop.xlane.xlu1 %1799 }
 0x714   : > { %v1803_v51 = vmul.f32 %v1801_v49, %v1801_v49  ;;  %v1802_v52 = vmul.f32 0.03125, %v1800_v50  ;;  %v1805_v46 = vsub.f32 %v1791_v38, %v1801_v49 }
 0x716   : > { %v1804_v53 = vsub.f32 %v1802_v52, %v1803_v51 }
 0x718   : > { %v1806_v45 = vadd.f32 1e-05, %v1804_v53 }
 0x71a   : > { %2537 = vrsqrt.f32 %v1806_v45 }
 0x724   : > { %v2538_v54 = vpop.eup %2537 }
 0x725   : > { %v1808_v56 = vmul.f32 %v2538_v54, %v1805_v46 }
 0x727   : > { %v1815_v58 = vmul.f32 %v2252_v55, %v1808_v56 }
 0x729   : > { %v1822_v59 = vadd.f32 %v2253_v57, %v1815_v58 }
 0x72b   : > { %v1823_v60 = vpack.c.bf16 %v1822_v59, %v1822_v59 }
 0x72d   : > { %2392 = vmatmul.mubr.msk.bf16.vlgmr.msra.gmra.mrb[28].mxu1 %vm628_vm1, %v1823_v60 }
 0x800   : > { %v1884_v3 = vpop.f32.mrb[28].mxu1 }
 0x801   : > { %v1885_v4 = vadd.f32 %v2254_v2, %v1884_v3  ;;  %v2393_v6 = vpop.f32.mrb[29].mxu1 }
 0x802   : > { %v1887_v7 = vpop.f32.mrb[30].mxu1 }
 0x803   : > { %v1891_v8 = vmul.f32 0.044715, %v1885_v4  ;;  %v2394_v10 = vpop.f32.mrb[31].mxu1  ;;  %v1890_v19 = vmul.f32 0.5, %v1885_v4 }
 0x805   : > { %v1892_v11 = vmul.f32 %v1891_v8, %v1885_v4 }
 0x807   : > { %v1893_v12 = vmul.f32 %v1892_v11, %v1885_v4 }
 0x809   : > { %v1894_v16 = vadd.f32 %v1893_v12, %v1885_v4 }
 0x80b   : > { %v1895_v17 = vmul.f32 0.7978846, %v1894_v16 }
 0x80d   : > { %2539 = vtanh.f32 %v1895_v17 }
 0x817   : > { %v2540_v18 = vpop.eup %2539 }
 0x818   : > { %v1897_v20 = vadd.f32 1.0, %v2540_v18 }
 0x81a   : > { %v1898_v0 = vmul.f32 %v1897_v20, %v1890_v19 }
 0x81c   : > { %v1899_v21 = vpack.c.bf16 %v1898_v0, %v1898_v0 }
 0x81e   : > { %2404 = vmatmul.mubr.msk.bf16.vlgmr.msra.gmra.mrb[24].mxu0 %vm1939_vm4, %v1899_v21 }
 0x8f1   : > { %v1977_v23 = vpop.f32.mrb[24].mxu0 }
 0x8f2   : > { %v1978_v24 = vadd.f32 %v2258_v22, %v1977_v23  ;;  %v2405_v26 = vpop.f32.mrb[25].mxu0 }
 0x8f3   : > { %v1980_v27 = vpop.f32.mrb[26].mxu0 }
 0x8f4   : > { %v1983_v28 = vadd.f32 %v1978_v24, %v1822_v59  ;;  %v2406_v29 = vpop.f32.mrb[27].mxu0 }
 0x8f6   : > { %v1986_v30 = vsel %vm628_vm1, %v1983_v28, 0.0  ;;  %v1989_v31 = vmul.f32 %v1983_v28, %v1983_v28 }
 0x8f7   : > { %1987 = vadd.xlane.f32.xlu0 %v1986_v30 }
 0x8f8   : > { %v1990_v32 = vsel %vm628_vm1, %v1989_v31, 0.0 }
 0x8f9   : > { %1991 = vadd.xlane.f32.xlu1 %v1990_v32 }
 0x8fa   : > { %2696 = shalt.err (!%p2693_p10)
}
 0x8fb   : > { %s2697_s26 = scalar_lea.hbm %s3330_s28, 128  ;;  %s2701_s17 = scalar_lea.hbm %s3467_s19, 256 }
 0x8fc   : > { %p2698_p0 = scmp.ne.s32.totalorder %s3330_s28, %s2697_s26  ;;  %p2702_p4 = scmp.lt.u32.totalorder %s3330_s28, %s3467_s19 }
 0x8fd   : > { %p2703_p12 = scmp.lt.u32.totalorder %s2701_s17, %s2697_s26  ;;  %p2705_p8 = scmp.lt.u32.totalorder %s2697_s26, %s3330_s28 }
 0x8fe   : > { %p2699_p2 = pnand %p2698_p0, %p3468_p11 }
 0x8ff   : > { %p2704_p7 = por %p2703_p12, %p2702_p4 }
 0x900   : > { %p2700_p3 = pneg %p2699_p2 }
 0x901   : > { %p2706_p13 = por %p2705_p8, %p2704_p7 }
 0x903   : > { %p2707_p1 = pnand %p2706_p13, %p2700_p3 }
 0x905   : > { %2710 = shalt.err (!%p2707_p1)
}
 0x906   : > { %2427 = dma.vmem_to_hbm [thread:$0]  (%p3468_p11), %s2036_s21, 128, %s3330_s28, %s2017_s29  }
 0x907   : > { %s3469_s18 = sld [smem:[#allocation27_spill]]  ;;  %s3470_s21 = sld [smem:[#allocation28_spill]] }
 0x908   : > { %s612_s29 = scalar_lea.vmem [#allocation12], %s2224_s0  ;;  %s3471_s30 = sld [smem:[#allocation30_spill]] }
 0x909   : > { %s2048_s24 = sshll.u32 %s612_s29, 4  ;;  %s2022_s15 = scalar_lea.sflag [#allocation13], %s3321_s13  ;;  %s3369_s24 = int_to_ptr.vmem [resolvable:$true] %s2048_s24 }
 0x90a   : > { %s2711_s20 = scalar_lea.vmem %s3369_s24, 128  ;;  %s2808_s0 = smov [#allocation12]  }
 0x90b   : > { %p2712_p6 = scmp.ne.s32.totalorder %s3369_s24, %s2711_s20  ;;  %s2715_s25 = sshll.u32 %s2808_s0, 4  ;;  %s2716_s25 = int_to_ptr.vmem [resolvable:$false] %s2715_s25 }
 0x90c   : > { %p2718_p10 = scmp.lt.s32.totalorder %s3369_s24, %s2716_s25 }
 0x90d   : > { %v2264_v41 = vld [vmem:[%s3469_s18] ss:$0 sm:$0xff]  ;;  %p2713_p9 = pnand %p2712_p6, %p3468_p11  ;;  %s2717_s18 = scalar_lea.vmem %s2716_s25, 256 }
 0x90e   : > { %v2265_v42 = vld [vmem:[%s3470_s21] ss:$0 sm:$0xff]  ;;  %s3367_s23 = scalar_lea.hbm %s3471_s30, %s2268_s14  ;;  %p2719_p0 = scmp.lt.s32.totalorder %s2717_s18, %s2711_s20 }
 0x90f   : > { %p2714_p5 = pneg %p2713_p9 }
 0x910   : > { %p2720_p2 = por %p2719_p0, %p2718_p10 }
 0x912   : > { %p2721_p3 = pnand %p2720_p2, %p2714_p5 }
 0x984   : > { %v1988_v5 = vpop.xlane.xlu0 %1987 }
 0x985   : > { %v1993_v33 = vmul.f32 0.03125, %v1988_v5 }
 0x986   : > { %v1992_v25 = vpop.xlane.xlu1 %1991 }
 0x987   : > { %v1995_v34 = vmul.f32 %v1993_v33, %v1993_v33  ;;  %v1994_v36 = vmul.f32 0.03125, %v1992_v25  ;;  %v1997_v9 = vsub.f32 %v1983_v28, %v1993_v33 }
 0x989   : > { %v1996_v39 = vsub.f32 %v1994_v36, %v1995_v34 }
 0x98b   : > { %v1998_v13 = vadd.f32 1e-05, %v1996_v39 }
 0x98d   : > { %2541 = vrsqrt.f32 %v1998_v13 }
 0x997   : > { %v2542_v40 = vpop.eup %2541 }
 0x998   : > { %v2000_v35 = vmul.f32 %v2542_v40, %v1997_v9 }
 0x99a   : > { %v2007_v37 = vmul.f32 %v2264_v41, %v2000_v35 }
 0x99c   : > { %v2014_v38 = vadd.f32 %v2265_v42, %v2007_v37 }
 0x99e   : > { %2015 = vst.msk [vmem:[%s612_s29] sm:$0xff] %vm628_vm1, %v2014_v38 }
 0x99f   : > { %2724 = shalt.err (!%p2721_p3)
}
 0x9a0   : > { %s2725_s13 = scalar_lea.hbm %s3367_s23, 128  ;;  %s2729_s28 = scalar_lea.hbm %s3471_s30, 256 }
 0x9a1   : > { %p2726_p4 = scmp.ne.s32.totalorder %s3367_s23, %s2725_s13  ;;  %p2730_p8 = scmp.lt.u32.totalorder %s3367_s23, %s3471_s30 }
 0x9a2   : > { %p2731_p13 = scmp.lt.u32.totalorder %s2729_s28, %s2725_s13  ;;  %p2733_p6 = scmp.lt.u32.totalorder %s2725_s13, %s3367_s23 }
 0x9a3   : > { %p2727_p12 = pnand %p2726_p4, %p3468_p11 }
 0x9a4   : > { %p2732_p1 = por %p2731_p13, %p2730_p8 }
 0x9a5   : > { %p2728_p7 = pneg %p2727_p12 }
 0x9a6   : > { %p2734_p9 = por %p2733_p6, %p2732_p1 }
 0x9a8   : > { %p2735_p5 = pnand %p2734_p9, %p2728_p7 }
 0x9aa   : > { %2738 = shalt.err (!%p2735_p5)
}
 0x9ab   : > { %2428 = dma.vmem_to_hbm [thread:$0]  (%p3468_p11), %s3369_s24, 128, %s3367_s23, %s2022_s15  }
 0x9ac PF: > { %s3472_s27 = sld [smem:[#allocation21_spill]]  ;;  %s3473_s17 = sld [smem:[#allocation19_spill]] }
 0x9ad   : > { %s3474_s20 = sld [smem:[#allocation25_spill]] }
 0x9b2   : > { %p2464_p10 = scmp.ge.s32.totalorder %s3472_s27, 2  ;;  %s2060_s0 = sand.u32 1, %s3473_s17  }
 0x9b3   : > { %p3475_p0 = scmp.ne.s32.totalorder %s3474_s20, 0  ;;  %s2061_s25 = scalar_lea.sflag [#allocation4], %s2060_s0 }
 0x9b5   : > { %p2448_p2 = pnand %p2464_p10, %p3475_p0 }
 0x9b7   : > { %2768 = dma.done.wait (!%p2448_p2), %s2061_s25, 128  }
 0x9b8   : > { %2770 = vsyncadd (!%p2448_p2), %s2061_s25, 4294967168  ;;  %s2070_s18 = scalar_lea.sflag [#allocation13], %s2060_s0 }
 0x9b9   : > { %2772 = dma.done.wait (!%p2448_p2), %s2070_s18, 128  }
 0x9ba   : > { %2774 = vsyncadd (!%p2448_p2), %s2070_s18, 4294967168  ;;  %s3476_s24 = sld [smem:[#allocation22_spill]]  ;;  %s3477_s16 = sld [smem:[#allocation20_spill]] }
 0x9bb   : > { %s3478_s23 = sld [smem:[#allocation23_spill]]  ;;  %s3479_s21 = smov %s2781_s22 }
 0x9c0   : > { %p33_p11 = scmp.ge.s32.totalorder %s3476_s24, 4   ;;  %s3480_s22 = smov %s3477_s16 }
 0x9c2   :  { %35 = sbr.rel (!%p33_p11) target bundleno = 14 (0xe), region = 159 }
 0x9c9   :  { %2075 = vsyncpa [#allocation3], 1 }
 0x9ca   :  { %2077 = vsyncpa [#allocation3 + $0x1], 1 }
 0x9cb   :  { %2078 = vsyncpa [#allocation6], 1 }
 0x9cc   :  { %2079 = vsyncpa [#allocation9], 1 }
 0x9cd   :  { %2080 = vsyncpa [#allocation4], 1 }
 0x9ce   :  { %2082 = vsyncpa [#allocation4 + $0x1], 1 }
 0x9cf   :  { %2083 = vsyncpa [#allocation13], 1 }
 0x9d0   :  { %2085 = vsyncpa [#allocation13 + $0x1], 1 }

</bundles_post_ra>
